<compile_context>
chip_gen: v6e
topology: v6e:2x2x1
jax: 0.10.0
libtpu: 0.0.40
codegen_flags: <defaults>
</compile_context>

<pallas_src>
import jax
import jax.numpy as jnp
from jax import lax
from jax.experimental import pallas as pl
from jax.experimental.pallas import tpu as pltpu

# ---------------- problem sizes (small, consistent with the module) ----------------
B = 2      # batch
T = 8      # sequence length
I = 32     # input_size
H = 32     # hidden_size
O = 32     # output_size
L = 2      # num_layers


# ---------------------------------- Pallas kernel ----------------------------------
def decoder_kernel(x_ref, h0_ref, c0_ref,
                   w_in_ref, b_step_ref, w_step_ref,
                   wfc_ref, bfc_ref,
                   pred_ref, hT_ref, cT_ref):
    """Fused 2-layer LSTM (skewed, one matmul + one merged cell per step) + Linear."""
    Tn, Bn, In = x_ref.shape
    Hn = w_step_ref.shape[0] // 2
    On = wfc_ref.shape[1]
    W2 = 2 * Hn                      # lane-stacked state width: [layer-0 | layer-1]
    G8 = 8 * Hn                      # interleaved gate width: 4 gate blocks of 2H

    # ---- Hoisted input projection (+ biases), time-major, off the recurrence ----
    # base[t] lanes, per gate block g: [ x_t @ Wih0_g + b0_g | b1_g ]
    x_all = x_ref[...].reshape(Tn * Bn, In)
    base = (jnp.dot(x_all, w_in_ref[...], preferred_element_type=jnp.float32)
            + b_step_ref[...]).reshape(Tn, Bn, G8)

    w_step = w_step_ref[...]         # (2H, 8H) block-structured step weight

    def cell(gates, c):
        # gates: (·, 8H) in gate blocks [i|f|g|o], each block [layer-0 (H) | layer-1 (H)]
        # c:     (·, 2H) = [c0 | c1].  Two full-tile EUP passes, then static lane slices.
        sig = jax.nn.sigmoid(gates)
        th = jnp.tanh(gates)
        i_g = sig[:, 0 * W2:1 * W2]
        f_g = sig[:, 1 * W2:2 * W2]
        g_g = th[:, 2 * W2:3 * W2]
        o_g = sig[:, 3 * W2:4 * W2]
        c_new = f_g * c + i_g * g_g
        h_new = o_g * jnp.tanh(c_new)
        return h_new, c_new

    h1_init = h0_ref[1]
    c1_init = c0_ref[1]
    # Persistent lane-stacked carries [layer-0 | layer-1] (review item 3).
    xh = jnp.concatenate([h0_ref[0], h1_init], axis=1)          # (B, 2H)
    cc = jnp.concatenate([c0_ref[0], c1_init], axis=1)          # (B, 2H)

    h0_fin = c0_fin = None
    outs = []
    # Uniform skewed recurrence: iteration s advances layer 0 to step s (s < T) and
    # layer 1 to step s-1 (s >= 1).  T+1 iterations; each puts exactly ONE MXU matmul
    # and ONE merged cell on the serial dependency chain.
    for s in range(Tn + 1):
        if s == Tn:
            # Layer 0 finished at iteration T-1; snapshot its final state before the
            # last (layer-1-only) iteration overwrites the layer-0 lanes with junk.
            h0_fin = xh[:, :Hn]
            c0_fin = cc[:, :Hn]
        m = jnp.dot(xh, w_step, preferred_element_type=jnp.float32)   # (B, 8H)
        # s == T reuses base[0]; its layer-0 contribution is discarded.
        gates = m + base[s % Tn]
        h_new, c_new = cell(gates, cc)
        if s == 0:
            # Prologue: only the layer-0 half (step 0) is meaningful; restore the
            # layer-1 initial state in the carries (one-time blend, off the loop).
            xh = jnp.concatenate([h_new[:, :Hn], h1_init], axis=1)
            cc = jnp.concatenate([c_new[:, :Hn], c1_init], axis=1)
        else:
            xh = h_new
            cc = c_new
            outs.append(h_new)       # lanes H:2H hold the layer-1 output of step s-1

    hT_ref[0] = h0_fin
    hT_ref[1] = xh[:, Hn:]
    cT_ref[0] = c0_fin
    cT_ref[1] = cc[:, Hn:]

    # ---- Batched Linear head: one post-loop sublane pack + one matmul + one store ----
    # Rows ordered b*T + t so the (B*T, O) result reshapes directly to (B, T, O).
    h_all = jnp.concatenate(
        [outs[t][b:b + 1, :] for b in range(Bn) for t in range(Tn)], axis=0)  # (B*T, 2H)
    pred = (jnp.dot(h_all, wfc_ref[...], preferred_element_type=jnp.float32)
            + bfc_ref[...])
    pred_ref[...] = pred.reshape(Bn, Tn, On)


# ------------------------------ weight packing (wrapper) ----------------------------
def _gate_blocks(w):
    """Split the trailing 4H gate axis into the 4 PyTorch gate blocks [i, f, g, o]."""
    return [w[:, g * H:(g + 1) * H] for g in range(4)]


def _pack_weights(params):
    """Build the fused, gate-interleaved weights consumed by the kernel.

    8H gate-axis layout: 4 gate blocks [i|f|g|o] (PyTorch order), each block being
    [layer-0 gate (H lanes) | layer-1 gate (H lanes)].
    """
    wi0 = _gate_blocks(params["wih0"])
    wh0 = _gate_blocks(params["whh0"])
    wi1 = _gate_blocks(params["wih1"])
    wh1 = _gate_blocks(params["whh1"])
    b0 = _gate_blocks(params["b0"])
    b1 = _gate_blocks(params["b1"])
    z_ih = jnp.zeros((I, H), jnp.float32)
    z_hh = jnp.zeros((H, H), jnp.float32)

    # (I, 8H): x_t contributes only to the layer-0 gate lanes.
    w_in = jnp.concatenate(
        [jnp.concatenate([wi0[g], z_ih], axis=1) for g in range(4)], axis=1)
    # (1, 8H): per-gate biases of both layers (b0 = b_ih0 + b_hh0, b1 = b_ih1 + b_hh1).
    b_step = jnp.concatenate(
        [jnp.concatenate([b0[g], b1[g]], axis=1) for g in range(4)], axis=1)
    # (2H, 8H): [[Whh0, Wih1], [0, Whh1]] with gate-interleaved columns, so that
    # [h0_t | h1_{t-1}] @ w_step yields layer-0 gates(t+1) and layer-1 gates(t) at once.
    w_step = jnp.concatenate(
        [jnp.concatenate([jnp.concatenate([wh0[g], wi1[g]], axis=1),
                          jnp.concatenate([z_hh, wh1[g]], axis=1)], axis=0)
         for g in range(4)], axis=1)
    # (2H, O): head weight zero-padded over the layer-0 half of the lane-stacked carry.
    wfc_pad = jnp.concatenate(
        [jnp.zeros((H, O), jnp.float32), params["wfc"]], axis=0)
    return w_in, b_step, w_step, wfc_pad


# ---------------------------------- wrapper -----------------------------------------
def decoder_forward(x_bti, hidden, params):
    """x_bti: (B, T, I) batch-first like PyTorch. hidden = (h0, c0), each (L, B, H)."""
    h0, c0 = hidden
    w_in, b_step, w_step, wfc_pad = _pack_weights(params)
    # One-time (2, 8, 32) layout op so the hoisted projection is time-major and the
    # kernel's per-step base[t] read is a contiguous slice (review item 5).
    x_tbi = jnp.transpose(x_bti, (1, 0, 2))

    vmem = pl.BlockSpec(memory_space=pltpu.MemorySpace.VMEM)
    pred, hT, cT = pl.pallas_call(
        decoder_kernel,
        out_shape=(
            jax.ShapeDtypeStruct((B, T, O), jnp.float32),
            jax.ShapeDtypeStruct((L, B, H), jnp.float32),
            jax.ShapeDtypeStruct((L, B, H), jnp.float32),
        ),
        in_specs=[vmem] * 8,
        out_specs=(vmem, vmem, vmem),
    )(x_tbi, h0, c0, w_in, b_step, w_step, wfc_pad, params["bfc"])
    return pred, (hT, cT)


# ------------------------------- pure-JAX reference ---------------------------------
def lstm_layer_ref(x_tbi, h0, c0, wih, whh, b):
    def step(carry, x_t):
        h, c = carry
        gates = x_t @ wih + h @ whh + b
        i_g = jax.nn.sigmoid(gates[:, 0 * H:1 * H])
        f_g = jax.nn.sigmoid(gates[:, 1 * H:2 * H])
        g_g = jnp.tanh(gates[:, 2 * H:3 * H])
        o_g = jax.nn.sigmoid(gates[:, 3 * H:4 * H])
        c_new = f_g * c + i_g * g_g
        h_new = o_g * jnp.tanh(c_new)
        return (h_new, c_new), h_new

    (hT, cT), ys = lax.scan(step, (h0, c0), x_tbi)
    return ys, hT, cT


def decoder_ref(x_btI, hidden, params):
    h0, c0 = hidden
    x_tbi = jnp.transpose(x_btI, (1, 0, 2))
    y0, h0f, c0f = lstm_layer_ref(x_tbi, h0[0], c0[0], params["wih0"], params["whh0"], params["b0"])
    y1, h1f, c1f = lstm_layer_ref(y0, h0[1], c0[1], params["wih1"], params["whh1"], params["b1"])
    pred = y1 @ params["wfc"] + params["bfc"]
    return (jnp.transpose(pred, (1, 0, 2)),
            (jnp.stack([h0f, h1f]), jnp.stack([c0f, c1f])))


# ---------------------------------- main --------------------------------------------
if __name__ == "__main__":
    key = jax.random.PRNGKey(0)
    keys = jax.random.split(key, 16)
    bound = 1.0 / jnp.sqrt(H)  # PyTorch LSTM/Linear init range

    def u(k, shape):
        return jax.random.uniform(k, shape, jnp.float32, -bound, bound)

    # Parameters (PyTorch shapes transposed for the x @ W convention).
    params = {
        "wih0": u(keys[0], (I, 4 * H)),
        "whh0": u(keys[1], (H, 4 * H)),
        "b0":   (u(keys[2], (4 * H,)) + u(keys[3], (4 * H,))).reshape(1, 4 * H),  # b_ih + b_hh
        "wih1": u(keys[4], (H, 4 * H)),
        "whh1": u(keys[5], (H, 4 * H)),
        "b1":   (u(keys[6], (4 * H,)) + u(keys[7], (4 * H,))).reshape(1, 4 * H),
        "wfc":  u(keys[8], (H, O)),
        "bfc":  u(keys[9], (O,)).reshape(1, O),
    }

    x = jax.random.normal(keys[10], (B, T, I), jnp.float32)
    h0 = jax.random.normal(keys[11], (L, B, H), jnp.float32)
    c0 = jax.random.normal(keys[12], (L, B, H), jnp.float32)

    pred, (hT, cT) = decoder_forward(x, (h0, c0), params)
    jax.block_until_ready((pred, hT, cT))

    pred_r, (hT_r, cT_r) = decoder_ref(x, (h0, c0), params)
    assert pred.shape == (B, T, O) and hT.shape == (L, B, H) and cT.shape == (L, B, H)
    assert jnp.allclose(pred, pred_r, atol=1e-5, rtol=1e-5)
    assert jnp.allclose(hT, hT_r, atol=1e-5, rtol=1e-5)
    assert jnp.allclose(cT, cT_r, atol=1e-5, rtol=1e-5)

    print("KERNEL_OK")
</pallas_src>

<mosaic_0001>
module attributes {stable_mosaic.version = 11 : i64} {
  func.func @decoder_kernel(%arg0: memref<8x2x32xf32, #tpu.memory_space<vmem>>, %arg1: memref<2x2x32xf32, #tpu.memory_space<vmem>>, %arg2: memref<2x2x32xf32, #tpu.memory_space<vmem>>, %arg3: memref<32x256xf32, #tpu.memory_space<vmem>>, %arg4: memref<1x256xf32, #tpu.memory_space<vmem>>, %arg5: memref<64x256xf32, #tpu.memory_space<vmem>>, %arg6: memref<64x32xf32, #tpu.memory_space<vmem>>, %arg7: memref<1x32xf32, #tpu.memory_space<vmem>>, %arg8: memref<2x8x32xf32, #tpu.memory_space<vmem>>, %arg9: memref<2x2x32xf32, #tpu.memory_space<vmem>>, %arg10: memref<2x2x32xf32, #tpu.memory_space<vmem>>) attributes {dimension_semantics = [], scalar_prefetch = 0 : i64, scratch_operands = 0 : i64, tpu.core_type = #tpu.core_type<tc>} {
    %c0 = arith.constant 0 : index
    %c0_0 = arith.constant 0 : index
    %c0_1 = arith.constant 0 : index
    %0 = vector.load %arg0[%c0, %c0_0, %c0_1] : memref<8x2x32xf32, #tpu.memory_space<vmem>>, vector<8x2x32xf32>
    %1 = vector.shape_cast %0 : vector<8x2x32xf32> to vector<16x32xf32>
    %c0_2 = arith.constant 0 : index
    %c0_3 = arith.constant 0 : index
    %2 = vector.load %arg3[%c0_2, %c0_3] : memref<32x256xf32, #tpu.memory_space<vmem>>, vector<32x256xf32>
    %cst = arith.constant dense<0.000000e+00> : vector<16x256xf32>
    %3 = tpu.matmul %1, %2, %cst {dimension_numbers = #tpu.dot_dimension_numbers<[1], [0], [0], [1], [0, 0, 1, 1], [], []>} : vector<16x32xf32>, vector<32x256xf32>, vector<16x256xf32> -> vector<16x256xf32>
    %c0_4 = arith.constant 0 : index
    %c0_5 = arith.constant 0 : index
    %4 = vector.load %arg4[%c0_4, %c0_5] : memref<1x256xf32, #tpu.memory_space<vmem>>, vector<1x256xf32>
    %5 = vector.broadcast %4 : vector<1x256xf32> to vector<16x256xf32>
    %6 = arith.addf %3, %5 : vector<16x256xf32>
    %7 = vector.shape_cast %6 : vector<16x256xf32> to vector<8x2x256xf32>
    %c0_6 = arith.constant 0 : index
    %c0_7 = arith.constant 0 : index
    %8 = vector.load %arg5[%c0_6, %c0_7] : memref<64x256xf32, #tpu.memory_space<vmem>>, vector<64x256xf32>
    %c1 = arith.constant 1 : index
    %c0_8 = arith.constant 0 : index
    %c0_9 = arith.constant 0 : index
    %9 = vector.load %arg1[%c1, %c0_8, %c0_9] : memref<2x2x32xf32, #tpu.memory_space<vmem>>, vector<1x2x32xf32>
    %10 = vector.shape_cast %9 : vector<1x2x32xf32> to vector<2x32xf32>
    %c1_10 = arith.constant 1 : index
    %c0_11 = arith.constant 0 : index
    %c0_12 = arith.constant 0 : index
    %11 = vector.load %arg2[%c1_10, %c0_11, %c0_12] : memref<2x2x32xf32, #tpu.memory_space<vmem>>, vector<1x2x32xf32>
    %12 = vector.shape_cast %11 : vector<1x2x32xf32> to vector<2x32xf32>
    %c0_13 = arith.constant 0 : index
    %c0_14 = arith.constant 0 : index
    %c0_15 = arith.constant 0 : index
    %13 = vector.load %arg1[%c0_13, %c0_14, %c0_15] : memref<2x2x32xf32, #tpu.memory_space<vmem>>, vector<1x2x32xf32>
    %14 = vector.shape_cast %13 : vector<1x2x32xf32> to vector<2x32xf32>
    %15 = tpu.concatenate %14, %10 in 1 : vector<2x32xf32>, vector<2x32xf32> -> vector<2x64xf32>
    %c0_16 = arith.constant 0 : index
    %c0_17 = arith.constant 0 : index
    %c0_18 = arith.constant 0 : index
    %16 = vector.load %arg2[%c0_16, %c0_17, %c0_18] : memref<2x2x32xf32, #tpu.memory_space<vmem>>, vector<1x2x32xf32>
    %17 = vector.shape_cast %16 : vector<1x2x32xf32> to vector<2x32xf32>
    %18 = tpu.concatenate %17, %12 in 1 : vector<2x32xf32>, vector<2x32xf32> -> vector<2x64xf32>
    %cst_19 = arith.constant dense<0.000000e+00> : vector<2x256xf32>
    %19 = tpu.matmul %15, %8, %cst_19 {dimension_numbers = #tpu.dot_dimension_numbers<[1], [0], [0], [1], [0, 0, 1, 1], [], []>} : vector<2x64xf32>, vector<64x256xf32>, vector<2x256xf32> -> vector<2x256xf32>
    %20 = vector.extract_strided_slice %7 {offsets = [0, 0, 0], sizes = [1, 2, 256], strides = [1, 1, 1]} : vector<8x2x256xf32> to vector<1x2x256xf32>
    %21 = vector.shape_cast %20 : vector<1x2x256xf32> to vector<2x256xf32>
    %22 = arith.addf %19, %21 : vector<2x256xf32>
    %23 = arith.negf %22 : vector<2x256xf32>
    %24 = math.exp %23 : vector<2x256xf32>
    %cst_20 = arith.constant 1.000000e+00 : f32
    %25 = vector.broadcast %cst_20 : f32 to vector<2x256xf32>
    %26 = arith.addf %25, %24 : vector<2x256xf32>
    %27 = arith.divf %25, %26 : vector<2x256xf32>
    %28 = math.tanh %22 : vector<2x256xf32>
    %29 = vector.extract_strided_slice %27 {offsets = [0, 0], sizes = [2, 64], strides = [1, 1]} : vector<2x256xf32> to vector<2x64xf32>
    %30 = vector.extract_strided_slice %27 {offsets = [0, 64], sizes = [2, 64], strides = [1, 1]} : vector<2x256xf32> to vector<2x64xf32>
    %31 = vector.extract_strided_slice %28 {offsets = [0, 128], sizes = [2, 64], strides = [1, 1]} : vector<2x256xf32> to vector<2x64xf32>
    %32 = vector.extract_strided_slice %27 {offsets = [0, 192], sizes = [2, 64], strides = [1, 1]} : vector<2x256xf32> to vector<2x64xf32>
    %33 = arith.mulf %30, %18 : vector<2x64xf32>
    %34 = arith.mulf %29, %31 : vector<2x64xf32>
    %35 = arith.addf %33, %34 : vector<2x64xf32>
    %36 = math.tanh %35 : vector<2x64xf32>
    %37 = arith.mulf %32, %36 : vector<2x64xf32>
    %38 = vector.extract_strided_slice %37 {offsets = [0, 0], sizes = [2, 32], strides = [1, 1]} : vector<2x64xf32> to vector<2x32xf32>
    %39 = tpu.concatenate %38, %10 in 1 : vector<2x32xf32>, vector<2x32xf32> -> vector<2x64xf32>
    %40 = vector.extract_strided_slice %35 {offsets = [0, 0], sizes = [2, 32], strides = [1, 1]} : vector<2x64xf32> to vector<2x32xf32>
    %41 = tpu.concatenate %40, %12 in 1 : vector<2x32xf32>, vector<2x32xf32> -> vector<2x64xf32>
    %cst_21 = arith.constant dense<0.000000e+00> : vector<2x256xf32>
    %42 = tpu.matmul %39, %8, %cst_21 {dimension_numbers = #tpu.dot_dimension_numbers<[1], [0], [0], [1], [0, 0, 1, 1], [], []>} : vector<2x64xf32>, vector<64x256xf32>, vector<2x256xf32> -> vector<2x256xf32>
    %43 = vector.extract_strided_slice %7 {offsets = [1, 0, 0], sizes = [1, 2, 256], strides = [1, 1, 1]} : vector<8x2x256xf32> to vector<1x2x256xf32>
    %44 = vector.shape_cast %43 : vector<1x2x256xf32> to vector<2x256xf32>
    %45 = arith.addf %42, %44 : vector<2x256xf32>
    %46 = arith.negf %45 : vector<2x256xf32>
    %47 = math.exp %46 : vector<2x256xf32>
    %cst_22 = arith.constant 1.000000e+00 : f32
    %48 = vector.broadcast %cst_22 : f32 to vector<2x256xf32>
    %49 = arith.addf %48, %47 : vector<2x256xf32>
    %50 = arith.divf %48, %49 : vector<2x256xf32>
    %51 = math.tanh %45 : vector<2x256xf32>
    %52 = vector.extract_strided_slice %50 {offsets = [0, 0], sizes = [2, 64], strides = [1, 1]} : vector<2x256xf32> to vector<2x64xf32>
    %53 = vector.extract_strided_slice %50 {offsets = [0, 64], sizes = [2, 64], strides = [1, 1]} : vector<2x256xf32> to vector<2x64xf32>
    %54 = vector.extract_strided_slice %51 {offsets = [0, 128], sizes = [2, 64], strides = [1, 1]} : vector<2x256xf32> to vector<2x64xf32>
    %55 = vector.extract_strided_slice %50 {offsets = [0, 192], sizes = [2, 64], strides = [1, 1]} : vector<2x256xf32> to vector<2x64xf32>
    %56 = arith.mulf %53, %41 : vector<2x64xf32>
    %57 = arith.mulf %52, %54 : vector<2x64xf32>
    %58 = arith.addf %56, %57 : vector<2x64xf32>
    %59 = math.tanh %58 : vector<2x64xf32>
    %60 = arith.mulf %55, %59 : vector<2x64xf32>
    %cst_23 = arith.constant dense<0.000000e+00> : vector<2x256xf32>
    %61 = tpu.matmul %60, %8, %cst_23 {dimension_numbers = #tpu.dot_dimension_numbers<[1], [0], [0], [1], [0, 0, 1, 1], [], []>} : vector<2x64xf32>, vector<64x256xf32>, vector<2x256xf32> -> vector<2x256xf32>
    %62 = vector.extract_strided_slice %7 {offsets = [2, 0, 0], sizes = [1, 2, 256], strides = [1, 1, 1]} : vector<8x2x256xf32> to vector<1x2x256xf32>
    %63 = vector.shape_cast %62 : vector<1x2x256xf32> to vector<2x256xf32>
    %64 = arith.addf %61, %63 : vector<2x256xf32>
    %65 = arith.negf %64 : vector<2x256xf32>
    %66 = math.exp %65 : vector<2x256xf32>
    %cst_24 = arith.constant 1.000000e+00 : f32
    %67 = vector.broadcast %cst_24 : f32 to vector<2x256xf32>
    %68 = arith.addf %67, %66 : vector<2x256xf32>
    %69 = arith.divf %67, %68 : vector<2x256xf32>
    %70 = math.tanh %64 : vector<2x256xf32>
    %71 = vector.extract_strided_slice %69 {offsets = [0, 0], sizes = [2, 64], strides = [1, 1]} : vector<2x256xf32> to vector<2x64xf32>
    %72 = vector.extract_strided_slice %69 {offsets = [0, 64], sizes = [2, 64], strides = [1, 1]} : vector<2x256xf32> to vector<2x64xf32>
    %73 = vector.extract_strided_slice %70 {offsets = [0, 128], sizes = [2, 64], strides = [1, 1]} : vector<2x256xf32> to vector<2x64xf32>
    %74 = vector.extract_strided_slice %69 {offsets = [0, 192], sizes = [2, 64], strides = [1, 1]} : vector<2x256xf32> to vector<2x64xf32>
    %75 = arith.mulf %72, %58 : vector<2x64xf32>
    %76 = arith.mulf %71, %73 : vector<2x64xf32>
    %77 = arith.addf %75, %76 : vector<2x64xf32>
    %78 = math.tanh %77 : vector<2x64xf32>
    %79 = arith.mulf %74, %78 : vector<2x64xf32>
    %cst_25 = arith.constant dense<0.000000e+00> : vector<2x256xf32>
    %80 = tpu.matmul %79, %8, %cst_25 {dimension_numbers = #tpu.dot_dimension_numbers<[1], [0], [0], [1], [0, 0, 1, 1], [], []>} : vector<2x64xf32>, vector<64x256xf32>, vector<2x256xf32> -> vector<2x256xf32>
    %81 = vector.extract_strided_slice %7 {offsets = [3, 0, 0], sizes = [1, 2, 256], strides = [1, 1, 1]} : vector<8x2x256xf32> to vector<1x2x256xf32>
    %82 = vector.shape_cast %81 : vector<1x2x256xf32> to vector<2x256xf32>
    %83 = arith.addf %80, %82 : vector<2x256xf32>
    %84 = arith.negf %83 : vector<2x256xf32>
    %85 = math.exp %84 : vector<2x256xf32>
    %cst_26 = arith.constant 1.000000e+00 : f32
    %86 = vector.broadcast %cst_26 : f32 to vector<2x256xf32>
    %87 = arith.addf %86, %85 : vector<2x256xf32>
    %88 = arith.divf %86, %87 : vector<2x256xf32>
    %89 = math.tanh %83 : vector<2x256xf32>
    %90 = vector.extract_strided_slice %88 {offsets = [0, 0], sizes = [2, 64], strides = [1, 1]} : vector<2x256xf32> to vector<2x64xf32>
    %91 = vector.extract_strided_slice %88 {offsets = [0, 64], sizes = [2, 64], strides = [1, 1]} : vector<2x256xf32> to vector<2x64xf32>
    %92 = vector.extract_strided_slice %89 {offsets = [0, 128], sizes = [2, 64], strides = [1, 1]} : vector<2x256xf32> to vector<2x64xf32>
    %93 = vector.extract_strided_slice %88 {offsets = [0, 192], sizes = [2, 64], strides = [1, 1]} : vector<2x256xf32> to vector<2x64xf32>
    %94 = arith.mulf %91, %77 : vector<2x64xf32>
    %95 = arith.mulf %90, %92 : vector<2x64xf32>
    %96 = arith.addf %94, %95 : vector<2x64xf32>
    %97 = math.tanh %96 : vector<2x64xf32>
    %98 = arith.mulf %93, %97 : vector<2x64xf32>
    %cst_27 = arith.constant dense<0.000000e+00> : vector<2x256xf32>
    %99 = tpu.matmul %98, %8, %cst_27 {dimension_numbers = #tpu.dot_dimension_numbers<[1], [0], [0], [1], [0, 0, 1, 1], [], []>} : vector<2x64xf32>, vector<64x256xf32>, vector<2x256xf32> -> vector<2x256xf32>
    %100 = vector.extract_strided_slice %7 {offsets = [4, 0, 0], sizes = [1, 2, 256], strides = [1, 1, 1]} : vector<8x2x256xf32> to vector<1x2x256xf32>
    %101 = vector.shape_cast %100 : vector<1x2x256xf32> to vector<2x256xf32>
    %102 = arith.addf %99, %101 : vector<2x256xf32>
    %103 = arith.negf %102 : vector<2x256xf32>
    %104 = math.exp %103 : vector<2x256xf32>
    %cst_28 = arith.constant 1.000000e+00 : f32
    %105 = vector.broadcast %cst_28 : f32 to vector<2x256xf32>
    %106 = arith.addf %105, %104 : vector<2x256xf32>
    %107 = arith.divf %105, %106 : vector<2x256xf32>
    %108 = math.tanh %102 : vector<2x256xf32>
    %109 = vector.extract_strided_slice %107 {offsets = [0, 0], sizes = [2, 64], strides = [1, 1]} : vector<2x256xf32> to vector<2x64xf32>
    %110 = vector.extract_strided_slice %107 {offsets = [0, 64], sizes = [2, 64], strides = [1, 1]} : vector<2x256xf32> to vector<2x64xf32>
    %111 = vector.extract_strided_slice %108 {offsets = [0, 128], sizes = [2, 64], strides = [1, 1]} : vector<2x256xf32> to vector<2x64xf32>
    %112 = vector.extract_strided_slice %107 {offsets = [0, 192], sizes = [2, 64], strides = [1, 1]} : vector<2x256xf32> to vector<2x64xf32>
    %113 = arith.mulf %110, %96 : vector<2x64xf32>
    %114 = arith.mulf %109, %111 : vector<2x64xf32>
    %115 = arith.addf %113, %114 : vector<2x64xf32>
    %116 = math.tanh %115 : vector<2x64xf32>
    %117 = arith.mulf %112, %116 : vector<2x64xf32>
    %cst_29 = arith.constant dense<0.000000e+00> : vector<2x256xf32>
    %118 = tpu.matmul %117, %8, %cst_29 {dimension_numbers = #tpu.dot_dimension_numbers<[1], [0], [0], [1], [0, 0, 1, 1], [], []>} : vector<2x64xf32>, vector<64x256xf32>, vector<2x256xf32> -> vector<2x256xf32>
    %119 = vector.extract_strided_slice %7 {offsets = [5, 0, 0], sizes = [1, 2, 256], strides = [1, 1, 1]} : vector<8x2x256xf32> to vector<1x2x256xf32>
    %120 = vector.shape_cast %119 : vector<1x2x256xf32> to vector<2x256xf32>
    %121 = arith.addf %118, %120 : vector<2x256xf32>
    %122 = arith.negf %121 : vector<2x256xf32>
    %123 = math.exp %122 : vector<2x256xf32>
    %cst_30 = arith.constant 1.000000e+00 : f32
    %124 = vector.broadcast %cst_30 : f32 to vector<2x256xf32>
    %125 = arith.addf %124, %123 : vector<2x256xf32>
    %126 = arith.divf %124, %125 : vector<2x256xf32>
    %127 = math.tanh %121 : vector<2x256xf32>
    %128 = vector.extract_strided_slice %126 {offsets = [0, 0], sizes = [2, 64], strides = [1, 1]} : vector<2x256xf32> to vector<2x64xf32>
    %129 = vector.extract_strided_slice %126 {offsets = [0, 64], sizes = [2, 64], strides = [1, 1]} : vector<2x256xf32> to vector<2x64xf32>
    %130 = vector.extract_strided_slice %127 {offsets = [0, 128], sizes = [2, 64], strides = [1, 1]} : vector<2x256xf32> to vector<2x64xf32>
    %131 = vector.extract_strided_slice %126 {offsets = [0, 192], sizes = [2, 64], strides = [1, 1]} : vector<2x256xf32> to vector<2x64xf32>
    %132 = arith.mulf %129, %115 : vector<2x64xf32>
    %133 = arith.mulf %128, %130 : vector<2x64xf32>
    %134 = arith.addf %132, %133 : vector<2x64xf32>
    %135 = math.tanh %134 : vector<2x64xf32>
    %136 = arith.mulf %131, %135 : vector<2x64xf32>
    %cst_31 = arith.constant dense<0.000000e+00> : vector<2x256xf32>
    %137 = tpu.matmul %136, %8, %cst_31 {dimension_numbers = #tpu.dot_dimension_numbers<[1], [0], [0], [1], [0, 0, 1, 1], [], []>} : vector<2x64xf32>, vector<64x256xf32>, vector<2x256xf32> -> vector<2x256xf32>
    %138 = vector.extract_strided_slice %7 {offsets = [6, 0, 0], sizes = [1, 2, 256], strides = [1, 1, 1]} : vector<8x2x256xf32> to vector<1x2x256xf32>
    %139 = vector.shape_cast %138 : vector<1x2x256xf32> to vector<2x256xf32>
    %140 = arith.addf %137, %139 : vector<2x256xf32>
    %141 = arith.negf %140 : vector<2x256xf32>
    %142 = math.exp %141 : vector<2x256xf32>
    %cst_32 = arith.constant 1.000000e+00 : f32
    %143 = vector.broadcast %cst_32 : f32 to vector<2x256xf32>
    %144 = arith.addf %143, %142 : vector<2x256xf32>
    %145 = arith.divf %143, %144 : vector<2x256xf32>
    %146 = math.tanh %140 : vector<2x256xf32>
    %147 = vector.extract_strided_slice %145 {offsets = [0, 0], sizes = [2, 64], strides = [1, 1]} : vector<2x256xf32> to vector<2x64xf32>
    %148 = vector.extract_strided_slice %145 {offsets = [0, 64], sizes = [2, 64], strides = [1, 1]} : vector<2x256xf32> to vector<2x64xf32>
    %149 = vector.extract_strided_slice %146 {offsets = [0, 128], sizes = [2, 64], strides = [1, 1]} : vector<2x256xf32> to vector<2x64xf32>
    %150 = vector.extract_strided_slice %145 {offsets = [0, 192], sizes = [2, 64], strides = [1, 1]} : vector<2x256xf32> to vector<2x64xf32>
    %151 = arith.mulf %148, %134 : vector<2x64xf32>
    %152 = arith.mulf %147, %149 : vector<2x64xf32>
    %153 = arith.addf %151, %152 : vector<2x64xf32>
    %154 = math.tanh %153 : vector<2x64xf32>
    %155 = arith.mulf %150, %154 : vector<2x64xf32>
    %cst_33 = arith.constant dense<0.000000e+00> : vector<2x256xf32>
    %156 = tpu.matmul %155, %8, %cst_33 {dimension_numbers = #tpu.dot_dimension_numbers<[1], [0], [0], [1], [0, 0, 1, 1], [], []>} : vector<2x64xf32>, vector<64x256xf32>, vector<2x256xf32> -> vector<2x256xf32>
    %157 = vector.extract_strided_slice %7 {offsets = [7, 0, 0], sizes = [1, 2, 256], strides = [1, 1, 1]} : vector<8x2x256xf32> to vector<1x2x256xf32>
    %158 = vector.shape_cast %157 : vector<1x2x256xf32> to vector<2x256xf32>
    %159 = arith.addf %156, %158 : vector<2x256xf32>
    %160 = arith.negf %159 : vector<2x256xf32>
    %161 = math.exp %160 : vector<2x256xf32>
    %cst_34 = arith.constant 1.000000e+00 : f32
    %162 = vector.broadcast %cst_34 : f32 to vector<2x256xf32>
    %163 = arith.addf %162, %161 : vector<2x256xf32>
    %164 = arith.divf %162, %163 : vector<2x256xf32>
    %165 = math.tanh %159 : vector<2x256xf32>
    %166 = vector.extract_strided_slice %164 {offsets = [0, 0], sizes = [2, 64], strides = [1, 1]} : vector<2x256xf32> to vector<2x64xf32>
    %167 = vector.extract_strided_slice %164 {offsets = [0, 64], sizes = [2, 64], strides = [1, 1]} : vector<2x256xf32> to vector<2x64xf32>
    %168 = vector.extract_strided_slice %165 {offsets = [0, 128], sizes = [2, 64], strides = [1, 1]} : vector<2x256xf32> to vector<2x64xf32>
    %169 = vector.extract_strided_slice %164 {offsets = [0, 192], sizes = [2, 64], strides = [1, 1]} : vector<2x256xf32> to vector<2x64xf32>
    %170 = arith.mulf %167, %153 : vector<2x64xf32>
    %171 = arith.mulf %166, %168 : vector<2x64xf32>
    %172 = arith.addf %170, %171 : vector<2x64xf32>
    %173 = math.tanh %172 : vector<2x64xf32>
    %174 = arith.mulf %169, %173 : vector<2x64xf32>
    %175 = vector.extract_strided_slice %174 {offsets = [0, 0], sizes = [2, 32], strides = [1, 1]} : vector<2x64xf32> to vector<2x32xf32>
    %176 = vector.extract_strided_slice %172 {offsets = [0, 0], sizes = [2, 32], strides = [1, 1]} : vector<2x64xf32> to vector<2x32xf32>
    %cst_35 = arith.constant dense<0.000000e+00> : vector<2x256xf32>
    %177 = tpu.matmul %174, %8, %cst_35 {dimension_numbers = #tpu.dot_dimension_numbers<[1], [0], [0], [1], [0, 0, 1, 1], [], []>} : vector<2x64xf32>, vector<64x256xf32>, vector<2x256xf32> -> vector<2x256xf32>
    %178 = vector.extract_strided_slice %7 {offsets = [0, 0, 0], sizes = [1, 2, 256], strides = [1, 1, 1]} : vector<8x2x256xf32> to vector<1x2x256xf32>
    %179 = vector.shape_cast %178 : vector<1x2x256xf32> to vector<2x256xf32>
    %180 = arith.addf %177, %179 : vector<2x256xf32>
    %181 = arith.negf %180 : vector<2x256xf32>
    %182 = math.exp %181 : vector<2x256xf32>
    %cst_36 = arith.constant 1.000000e+00 : f32
    %183 = vector.broadcast %cst_36 : f32 to vector<2x256xf32>
    %184 = arith.addf %183, %182 : vector<2x256xf32>
    %185 = arith.divf %183, %184 : vector<2x256xf32>
    %186 = math.tanh %180 : vector<2x256xf32>
    %187 = vector.extract_strided_slice %185 {offsets = [0, 0], sizes = [2, 64], strides = [1, 1]} : vector<2x256xf32> to vector<2x64xf32>
    %188 = vector.extract_strided_slice %185 {offsets = [0, 64], sizes = [2, 64], strides = [1, 1]} : vector<2x256xf32> to vector<2x64xf32>
    %189 = vector.extract_strided_slice %186 {offsets = [0, 128], sizes = [2, 64], strides = [1, 1]} : vector<2x256xf32> to vector<2x64xf32>
    %190 = vector.extract_strided_slice %185 {offsets = [0, 192], sizes = [2, 64], strides = [1, 1]} : vector<2x256xf32> to vector<2x64xf32>
    %191 = arith.mulf %188, %172 : vector<2x64xf32>
    %192 = arith.mulf %187, %189 : vector<2x64xf32>
    %193 = arith.addf %191, %192 : vector<2x64xf32>
    %194 = math.tanh %193 : vector<2x64xf32>
    %195 = arith.mulf %190, %194 : vector<2x64xf32>
    %c0_37 = arith.constant 0 : index
    %c0_38 = arith.constant 0 : index
    %c0_39 = arith.constant 0 : index
    %196 = vector.load %arg9[%c0_37, %c0_38, %c0_39] : memref<2x2x32xf32, #tpu.memory_space<vmem>>, vector<1x2x32xf32>
    %197 = vector.shape_cast %196 : vector<1x2x32xf32> to vector<2x32xf32>
    %198 = vector.shape_cast %175 : vector<2x32xf32> to vector<1x2x32xf32>
    tpu.vector_store %arg9[%c0_37, %c0_38, %c0_39], %198 {strides = array<i32>} : memref<2x2x32xf32, #tpu.memory_space<vmem>>, vector<1x2x32xf32>,
    %199 = vector.extract_strided_slice %195 {offsets = [0, 32], sizes = [2, 32], strides = [1, 1]} : vector<2x64xf32> to vector<2x32xf32>
    %c1_40 = arith.constant 1 : index
    %c0_41 = arith.constant 0 : index
    %c0_42 = arith.constant 0 : index
    %200 = vector.load %arg9[%c1_40, %c0_41, %c0_42] : memref<2x2x32xf32, #tpu.memory_space<vmem>>, vector<1x2x32xf32>
    %201 = vector.shape_cast %200 : vector<1x2x32xf32> to vector<2x32xf32>
    %202 = vector.shape_cast %199 : vector<2x32xf32> to vector<1x2x32xf32>
    tpu.vector_store %arg9[%c1_40, %c0_41, %c0_42], %202 {strides = array<i32>} : memref<2x2x32xf32, #tpu.memory_space<vmem>>, vector<1x2x32xf32>,
    %c0_43 = arith.constant 0 : index
    %c0_44 = arith.constant 0 : index
    %c0_45 = arith.constant 0 : index
    %203 = vector.load %arg10[%c0_43, %c0_44, %c0_45] : memref<2x2x32xf32, #tpu.memory_space<vmem>>, vector<1x2x32xf32>
    %204 = vector.shape_cast %203 : vector<1x2x32xf32> to vector<2x32xf32>
    %205 = vector.shape_cast %176 : vector<2x32xf32> to vector<1x2x32xf32>
    tpu.vector_store %arg10[%c0_43, %c0_44, %c0_45], %205 {strides = array<i32>} : memref<2x2x32xf32, #tpu.memory_space<vmem>>, vector<1x2x32xf32>,
    %206 = vector.extract_strided_slice %193 {offsets = [0, 32], sizes = [2, 32], strides = [1, 1]} : vector<2x64xf32> to vector<2x32xf32>
    %c1_46 = arith.constant 1 : index
    %c0_47 = arith.constant 0 : index
    %c0_48 = arith.constant 0 : index
    %207 = vector.load %arg10[%c1_46, %c0_47, %c0_48] : memref<2x2x32xf32, #tpu.memory_space<vmem>>, vector<1x2x32xf32>
    %208 = vector.shape_cast %207 : vector<1x2x32xf32> to vector<2x32xf32>
    %209 = vector.shape_cast %206 : vector<2x32xf32> to vector<1x2x32xf32>
    tpu.vector_store %arg10[%c1_46, %c0_47, %c0_48], %209 {strides = array<i32>} : memref<2x2x32xf32, #tpu.memory_space<vmem>>, vector<1x2x32xf32>,
    %210 = vector.extract_strided_slice %60 {offsets = [0, 0], sizes = [1, 64], strides = [1, 1]} : vector<2x64xf32> to vector<1x64xf32>
    %211 = vector.extract_strided_slice %79 {offsets = [0, 0], sizes = [1, 64], strides = [1, 1]} : vector<2x64xf32> to vector<1x64xf32>
    %212 = vector.extract_strided_slice %98 {offsets = [0, 0], sizes = [1, 64], strides = [1, 1]} : vector<2x64xf32> to vector<1x64xf32>
    %213 = vector.extract_strided_slice %117 {offsets = [0, 0], sizes = [1, 64], strides = [1, 1]} : vector<2x64xf32> to vector<1x64xf32>
    %214 = vector.extract_strided_slice %136 {offsets = [0, 0], sizes = [1, 64], strides = [1, 1]} : vector<2x64xf32> to vector<1x64xf32>
    %215 = vector.extract_strided_slice %155 {offsets = [0, 0], sizes = [1, 64], strides = [1, 1]} : vector<2x64xf32> to vector<1x64xf32>
    %216 = vector.extract_strided_slice %174 {offsets = [0, 0], sizes = [1, 64], strides = [1, 1]} : vector<2x64xf32> to vector<1x64xf32>
    %217 = vector.extract_strided_slice %195 {offsets = [0, 0], sizes = [1, 64], strides = [1, 1]} : vector<2x64xf32> to vector<1x64xf32>
    %218 = vector.extract_strided_slice %60 {offsets = [1, 0], sizes = [1, 64], strides = [1, 1]} : vector<2x64xf32> to vector<1x64xf32>
    %219 = vector.extract_strided_slice %79 {offsets = [1, 0], sizes = [1, 64], strides = [1, 1]} : vector<2x64xf32> to vector<1x64xf32>
    %220 = vector.extract_strided_slice %98 {offsets = [1, 0], sizes = [1, 64], strides = [1, 1]} : vector<2x64xf32> to vector<1x64xf32>
    %221 = vector.extract_strided_slice %117 {offsets = [1, 0], sizes = [1, 64], strides = [1, 1]} : vector<2x64xf32> to vector<1x64xf32>
    %222 = vector.extract_strided_slice %136 {offsets = [1, 0], sizes = [1, 64], strides = [1, 1]} : vector<2x64xf32> to vector<1x64xf32>
    %223 = vector.extract_strided_slice %155 {offsets = [1, 0], sizes = [1, 64], strides = [1, 1]} : vector<2x64xf32> to vector<1x64xf32>
    %224 = vector.extract_strided_slice %174 {offsets = [1, 0], sizes = [1, 64], strides = [1, 1]} : vector<2x64xf32> to vector<1x64xf32>
    %225 = vector.extract_strided_slice %195 {offsets = [1, 0], sizes = [1, 64], strides = [1, 1]} : vector<2x64xf32> to vector<1x64xf32>
    %226 = tpu.concatenate %210, %211, %212, %213, %214, %215, %216, %217, %218, %219, %220, %221, %222, %223, %224, %225 in 0 : vector<1x64xf32>, vector<1x64xf32>, vector<1x64xf32>, vector<1x64xf32>, vector<1x64xf32>, vector<1x64xf32>, vector<1x64xf32>, vector<1x64xf32>, vector<1x64xf32>, vector<1x64xf32>, vector<1x64xf32>, vector<1x64xf32>, vector<1x64xf32>, vector<1x64xf32>, vector<1x64xf32>, vector<1x64xf32> -> vector<16x64xf32>
    %c0_49 = arith.constant 0 : index
    %c0_50 = arith.constant 0 : index
    %227 = vector.load %arg6[%c0_49, %c0_50] : memref<64x32xf32, #tpu.memory_space<vmem>>, vector<64x32xf32>
    %cst_51 = arith.constant dense<0.000000e+00> : vector<16x32xf32>
    %228 = tpu.matmul %226, %227, %cst_51 {dimension_numbers = #tpu.dot_dimension_numbers<[1], [0], [0], [1], [0, 0, 1, 1], [], []>} : vector<16x64xf32>, vector<64x32xf32>, vector<16x32xf32> -> vector<16x32xf32>
    %c0_52 = arith.constant 0 : index
    %c0_53 = arith.constant 0 : index
    %229 = vector.load %arg7[%c0_52, %c0_53] : memref<1x32xf32, #tpu.memory_space<vmem>>, vector<1x32xf32>
    %230 = vector.broadcast %229 : vector<1x32xf32> to vector<16x32xf32>
    %231 = arith.addf %228, %230 : vector<16x32xf32>
    %232 = vector.shape_cast %231 : vector<16x32xf32> to vector<2x8x32xf32>
    %c0_54 = arith.constant 0 : index
    %c0_55 = arith.constant 0 : index
    %c0_56 = arith.constant 0 : index
    %233 = vector.load %arg8[%c0_54, %c0_55, %c0_56] : memref<2x8x32xf32, #tpu.memory_space<vmem>>, vector<2x8x32xf32>
    tpu.vector_store %arg8[%c0_54, %c0_55, %c0_56], %232 {strides = array<i32>} : memref<2x8x32xf32, #tpu.memory_space<vmem>>, vector<2x8x32xf32>,
    return
  }
}

</mosaic_0001>

<bundles_post_ra>
// kernel: tpu_custom_call.1
= control target key start
LH: loop header
LB: loop body
LE: loop exit
PB: predicated region body
PF: predicated region fallthrough
CT: control target
= control target key end

     0   :  { %16 = vsyncpa [#allocation3], 0  ;;  %s2235_s0 = inlined_call_operand.vmem [shape: f32[8,2,32], index: 0, kind: input, shape index: {}]   ;;  %s2236_s1 = inlined_call_operand.vmem [shape: f32[2,2,32], index: 1, kind: input, shape index: {}]   ;;  %s2237_s2 = inlined_call_operand.vmem [shape: f32[2,2,32], index: 2, kind: input, shape index: {}]   ;;  %s2238_s3 = inlined_call_operand.vmem [shape: f32[32,256], index: 3, kind: input, shape index: {}]   ;;  %s2239_s4 = inlined_call_operand.vmem [shape: f32[1,256], index: 4, kind: input, shape index: {}]   ;;  %s2240_s5 = inlined_call_operand.hbm [shape: f32[64,256], index: 5, kind: input, shape index: {}]   ;;  %s2241_s6 = inlined_call_operand.vmem [shape: f32[64,32], index: 6, kind: input, shape index: {}]   ;;  %s2242_s7 = inlined_call_operand.vmem [shape: f32[1,32], index: 7, kind: input, shape index: {}]   ;;  %s2243_s8 = inlined_call_operand.hbm [shape: f32[2,8,32], index: 8, kind: output, shape index: {0}]   ;;  %s2244_s9 = inlined_call_operand.hbm [shape: f32[2,2,32], index: 9, kind: output, shape index: {1}]   ;;  %s2245_s10 = inlined_call_operand.hbm [shape: f32[2,2,32], index: 10, kind: output, shape index: {2}]  }
   0x1   :  { %17 = vsyncpa [#allocation4], 0 }
   0x2   :  { %18 = vsyncpa [#allocation7], 0  ;;  %s1738_s13 = smov [#allocation2]  }
   0x3   :  { %s34_s14 = sshll.u32 %s1738_s13, 4  ;;  %s35_s14 = int_to_ptr.vmem [resolvable:$true] %s34_s14 }
   0x4   :  { %s1660_s15 = scalar_lea.vmem %s35_s14, 2048  ;;  %p1665_p1 = scmp.lt.s32.totalorder %s35_s14, %s35_s14 }
   0x5   :  { %p1661_p0 = scmp.ne.s32.totalorder %s35_s14, %s1660_s15  ;;  %p1666_p2 = scmp.lt.s32.totalorder %s1660_s15, %s1660_s15 }
   0x7   :  { %p1667_p3 = por %p1666_p2, %p1665_p1 }
   0x9   :  { %p1668_p4 = pnand %p1667_p3, %p1661_p0 }
   0xb   :  { %1671 = shalt.err (!%p1668_p4)
}
   0xc   :  { %s1739_s16 = smov 256   ;;  %s1740_s17 = smov 16  }
   0xd   :  { %40 = dma.hbm_to_vmem [thread:$0]  %s2240_s5, 2048, %s35_s14, [#allocation3], %s1739_s16, %s1739_s16, %s1740_s17  }
   0xe   :  { %1732 = dma.done.wait [#allocation3], 2048  }
   0xf   :  { %1733 = vsyncadd [#allocation3], 4294965248  ;;  %v1741_v0 = vmov 0.0   ;;  %v66_v1 = vlaneseq  ;;  %v1742_v2 = vmov 1983009808   ;;  %v63_v7 = vld [vmem:[%s2238_s3 + $0x38] sm:$0xff] }
  0x10   :  { %187 = vmatprep.mubr.f32.mxu0 %v1741_v0  ;;  %350 = vmatprep.mubr.f32.mxu1 %v1741_v0  ;;  %v87_v3 = vunpack.c.l.s4 %v1742_v2  ;;  %v1470_v6 = vld [vmem:[%s2236_s1 + $0x2] sm:$0x3]  ;;  %v62_v8 = vld [vmem:[%s2238_s3 + $0x30] sm:$0xff]  ;;  %s1743_s25 = smov 32   ;;  %v61_v9 = vld [vmem:[%s2238_s3 + $0x28] sm:$0xff]  ;;  %vm118_vm0 = vcmask 261120  }
  0x11   :  { %v1811_v4 = vshrl.u32 %v66_v1, 7  ;;  %262 = vrot.lane.b32.xlu0 %v1470_v6, %s1743_s25  ;;  %147 = vmatprep.subr.mxu0 %v63_v7  ;;  %v60_v10 = vld [vmem:[%s2238_s3 + $0x20] sm:$0xff]  ;;  %v59_v11 = vld [vmem:[%s2238_s3 + $0x18] sm:$0xff]  ;;  %v58_v13 = vld [vmem:[%s2238_s3 + $0x10] sm:$0xff]  ;;  %vm282_vm1 = vcmask 523264   ;;  %vm1297_vm2 = vcmask 1040384  }
  0x12   :  { %v88_v5 = vunpack.c.0.s8 %v87_v3  ;;  %148 = vmatpush1.msra.mxu0 %v62_v8  ;;  %v1832_v12 = vld [vmem:[#allocation2 + $0x78] sm:$0xff]  ;;  %v1837_v14 = vld [vmem:[#allocation2 + $0x70] sm:$0xff]  ;;  %v57_v15 = vld [vmem:[%s2238_s3 + $0x8] sm:$0xff]  ;;  %vm1299_vm3 = vcmask 1041408   ;;  %vm1301_vm4 = vcmask 1042432   ;;  %vm1303_vm5 = vcmask 1043456  }
  0x13   :  { %149 = vmatprep.subr.mxu0 %v61_v9  ;;  %302 = vmatprep.subr.mxu1 %v1832_v12  ;;  %v1843_v16 = vld [vmem:[#allocation2 + $0x68] sm:$0xff]  ;;  %v56_v17 = vld [vmem:[%s2238_s3] sm:$0xff]  ;;  %v1867_v25 = vld [vmem:[#allocation2 + $0x58] sm:$0xff]  ;;  %v68_v48 = vsub.s32 0, %v1811_v4  ;;  %v72_v50 = vsub.s32 1, %v1811_v4  ;;  %vm1305_vm6 = vcmask 1044480  }
  0x14   :  { %v1849_v18 = vsub.s32 %v88_v5, %v1811_v4  ;;  %150 = vmatpush1.msra.mxu0 %v60_v10  ;;  %303 = vmatpush1.msra.mxu1 %v1837_v14  ;;  %v1852_v19 = vld [vmem:[#allocation2 + $0x60] sm:$0xff]  ;;  %v1870_v27 = vld [vmem:[#allocation2 + $0x50] sm:$0xff]  ;;  %v1872_v28 = vld [vmem:[#allocation2 + $0x48] sm:$0xff]  ;;  %vm1307_vm7 = vcmask 1045504   ;;  %vm1250_vm8 = vcmask 254976   ;;  %vm1309_vm9 = vcmask 1046528  }
  0x15   :  { %v48_v20 = vld [vmem:[%s2235_s0] sm:$0x3]  ;;  %v49_v21 = vld [vmem:[%s2235_s0 + $0x2] sm:$0x3]  ;;  %151 = vmatprep.subr.mxu0 %v59_v11  ;;  %304 = vmatprep.subr.mxu1 %v1843_v16  ;;  %v50_v22 = vld [vmem:[%s2235_s0 + $0x4] sm:$0x3] }
  0x16   :  { %v51_v23 = vld [vmem:[%s2235_s0 + $0x6] sm:$0x3]  ;;  %v84_v24 = vcombine.low %v48_v20, %v49_v21  ;;  %152 = vmatpush1.msra.mxu0 %v58_v13  ;;  %305 = vmatpush1.msra.mxu1 %v1852_v19  ;;  %v1880_v32 = vld [vmem:[#allocation2 + $0x38] sm:$0xff]  ;;  %v1471_v33 = vld [vmem:[%s2237_s2 + $0x2] sm:$0x3] }
  0x17   :  { %v85_v26 = vcombine.low %v50_v22, %v51_v23  ;;  %153 = vmatprep.subr.mxu0 %v57_v15  ;;  %306 = vmatprep.subr.mxu1 %v1867_v25  ;;  %v1876_v30 = vld [vmem:[#allocation2 + $0x40] sm:$0xff]  ;;  %v1886_v34 = vld [vmem:[#allocation2 + $0x30] sm:$0xff]  ;;  %v1890_v36 = vld [vmem:[#allocation2 + $0x28] sm:$0xff] }
  0x18   :  { %v92_v29 = vrot.slane %v84_v24, %v1849_v18  ;;  %154 = vmatpush1.msra.mxu0 %v56_v17  ;;  %307 = vmatpush1.msra.mxu1 %v1870_v27  ;;  %v1894_v37 = vld [vmem:[#allocation2 + $0x20] sm:$0xff]  ;;  %v1898_v38 = vld [vmem:[#allocation2 + $0x18] sm:$0xff]  ;;  %v1901_v39 = vld [vmem:[#allocation2 + $0x10] sm:$0xff] }
  0x19   :  { %v99_v31 = vrot.slane %v85_v26, %v1849_v18  ;;  %308 = vmatprep.subr.mxu1 %v1872_v28  ;;  %268 = vrot.lane.b32.xlu0 %v1471_v33, %s1743_s25  ;;  %v1905_v40 = vld [vmem:[#allocation2 + $0x8] sm:$0xff]  ;;  %v1909_v41 = vld [vmem:[#allocation2] sm:$0xff] }
  0x1a   :  { %309 = vmatpush1.msra.mxu1 %v1876_v30  ;;  %422 = vmatprep.subr.mxu0 %v1832_v12  ;;  %v260_v42 = vld [vmem:[%s2236_s1] sm:$0x3]  ;;  %s1744_s1 = smov 64   ;;  %v52_v10 = vld [vmem:[%s2235_s0 + $0x8] sm:$0x3] }
  0x1b   :  { %v100_v35 = vcombine.low %v92_v29, %v99_v31  ;;  %310 = vmatprep.subr.mxu1 %v1880_v32  ;;  %v266_v45 = vld [vmem:[%s2237_s2] sm:$0x3]  ;;  %v53_v11 = vld [vmem:[%s2235_s0 + $0xa] sm:$0x3]  ;;  %v54_v13 = vld [vmem:[%s2235_s0 + $0xc] sm:$0x3] }
  0x1c   :  { %311 = vmatpush1.msra.mxu1 %v1886_v34  ;;  %v64_v49 = vld [vmem:[%s2239_s4] sm:$0x3]  ;;  %v55_v15 = vld [vmem:[%s2235_s0 + $0xe] sm:$0x3]  ;;  %v101_v17 = vcombine.low %v52_v10, %v53_v11 }
  0x1d   :  { %1468 = vmatmul.mubr.msk.f32.vlgmr.msra.gmra.mxu0 %vm118_vm0, %v100_v35  ;;  %312 = vmatprep.subr.mxu1 %v1890_v36  ;;  %v1968_v51 = vrot.slane %v64_v49, %v68_v48  ;;  %v1970_v52 = vrot.slane %v64_v49, %v72_v50  ;;  %v102_v20 = vcombine.low %v54_v13, %v55_v15 }
  0x1e   :  { %423 = vmatpush1.msra.mxu0 %v1837_v14  ;;  %313 = vmatpush1.msra.mxu1 %v1894_v37  ;;  %v109_v21 = vrot.slane %v101_v17, %v1849_v18 }
  0x1f   :  { %424 = vmatprep.subr.mxu0 %v1843_v16  ;;  %314 = vmatprep.subr.mxu1 %v1898_v38  ;;  %v116_v23 = vrot.slane %v102_v20, %v1849_v18 }
  0x20   :  { %425 = vmatpush1.msra.mxu0 %v1852_v19  ;;  %315 = vmatpush1.msra.mxu1 %v1901_v39 }
  0x21   :  { %426 = vmatprep.subr.mxu0 %v1867_v25  ;;  %316 = vmatprep.subr.mxu1 %v1905_v40  ;;  %v117_v26 = vcombine.low %v109_v21, %v116_v23 }
  0x22   :  { %427 = vmatpush1.msra.mxu0 %v1870_v27  ;;  %317 = vmatpush1.msra.mxu1 %v1909_v41 }
  0x23   :  { %428 = vmatprep.subr.mxu0 %v1872_v28  ;;  %193 = vmatprep.mubr.f32.mxu0 %v1741_v0 }
  0x24   :  { %429 = vmatpush1.msra.mxu0 %v1876_v30  ;;  %534 = vmatprep.subr.mxu1 %v1832_v12 }
  0x25   :  { %430 = vmatprep.subr.mxu0 %v1880_v32  ;;  %1469 = vmatmul.mubr.msk.f32.gmra.mxu0 %vm118_vm0, %v117_v26 }
  0x26   :  { %431 = vmatpush1.msra.mxu0 %v1886_v34  ;;  %470 = vmatprep.mubr.f32.mxu0 %v1741_v0 }
  0x27   :  { %432 = vmatprep.subr.mxu0 %v1890_v36 }
  0x28   :  { %433 = vmatpush1.msra.mxu0 %v1894_v37 }
  0x29   :  { %434 = vmatprep.subr.mxu0 %v1898_v38 }
  0x2a   :  { %435 = vmatpush1.msra.mxu0 %v1901_v39 }
  0x2b   :  { %436 = vmatprep.subr.mxu0 %v1905_v40 }
  0x2c   :  { %437 = vmatpush1.msra.mxu0 %v1909_v41 }
  0x2d   :  { %642 = vmatprep.subr.mxu0 %v1832_v12 }
  0x83   :  { %v1933_v43 = vpop.permute.xlu0 %262 }
  0x84   :  { %v265_v44 = vsel %vm118_vm0, %v260_v42, %v1933_v43 }
  0x85   :  { %1472 = vmatmul.mubr.msk.f32.vlgmr.msra.gmra.mxu1 %vm282_vm1, %v265_v44 }
  0x86   :  { %535 = vmatpush1.msra.mxu1 %v1837_v14  ;;  %582 = vmatprep.mubr.f32.mxu1 %v1741_v0 }
  0x87   :  { %536 = vmatprep.subr.mxu1 %v1843_v16 }
  0x88   :  { %537 = vmatpush1.msra.mxu1 %v1852_v19 }
  0x89   :  { %538 = vmatprep.subr.mxu1 %v1867_v25 }
  0x8a   :  { %539 = vmatpush1.msra.mxu1 %v1870_v27 }
  0x8b   :  { %v1947_v46 = vpop.permute.xlu0 %268  ;;  %540 = vmatprep.subr.mxu1 %v1872_v28 }
  0x8c   :  { %v271_v47 = vsel %vm118_vm0, %v266_v45, %v1947_v46  ;;  %541 = vmatpush1.msra.mxu1 %v1876_v30 }
  0x8d   :  { %371 = vrot.lane.b32.xlu1 %v271_v47, %s1744_s1  ;;  %542 = vmatprep.subr.mxu1 %v1880_v32 }
  0x8e   :  { %543 = vmatpush1.msra.mxu1 %v1886_v34 }
  0x8f   :  { %544 = vmatprep.subr.mxu1 %v1890_v36 }
  0x90   :  { %545 = vmatpush1.msra.mxu1 %v1894_v37 }
  0x91   :  { %546 = vmatprep.subr.mxu1 %v1898_v38 }
  0x92   :  { %547 = vmatpush1.msra.mxu1 %v1901_v39 }
  0x93   :  { %548 = vmatprep.subr.mxu1 %v1905_v40 }
  0x94   :  { %549 = vmatpush1.msra.mxu1 %v1909_v41 }
  0x95   :  { %750 = vmatprep.subr.mxu1 %v1832_v12 }
  0xdd   :  { %v189_v53 = vpop.f32.mrf.mxu0 }
  0xde   :  { %v1973_v54 = vadd.f32 %v189_v53, %v1968_v51 }
  0xdf   :  { %v191_v55 = vpop.f32.mrf.mxu0 }
  0xe0   :  { %v1976_v56 = vadd.f32 %v191_v55, %v1970_v52 }
  0xe2   :  { %v205_v57 = vcombine.high %v1973_v54, %v1976_v56  ;;  %v204_v58 = vcombine.low %v1973_v54, %v1976_v56 }
  0xe4   :  { %v1983_v59 = vrot.slane %v204_v58, %v1849_v18  ;;  %v219_v26 = vrot.slane %v205_v57, %v1849_v18 }
  0xe6   :  { %v1987_v60 = vrot.slane %v1983_v59, %v1849_v18 }
  0xe8   :  { %v1992_v2 = vcombine.high %v1987_v60, %v1987_v60 }
  0xff   :  { %v372_v24 = vpop.permute.xlu1 %371 }
 0x145   :  { %v352_v61 = vpop.f32.mrf.mxu1 }
 0x146   :  { %v353_v62 = vadd.f32 %v352_v61, %v1987_v60  ;;  %v220_v61 = vcombine.high %v1983_v59, %v1983_v59 }
 0x147   :  { %v354_v1 = vpop.f32.mrf.mxu1 }
 0x148   :  { %v1473_v63 = vmul.f32 -1.442695, %v353_v62  ;;  %v355_v3 = vadd.f32 %v354_v1, %v1992_v2  ;;  %v399_v62 = vrot.slane %v220_v61, %v1849_v18 }
 0x14a   :  { %1544 = vpow2.f32 %v1473_v63  ;;  %v1474_v9 = vmul.f32 -1.442695, %v355_v3 }
 0x14b   :  { %1546 = vtanh.f32 %v355_v3 }
 0x157   :  { %v1545_v4 = vpop.eup %1544 }
 0x158   :  { %v363_v5 = vadd.f32 1.0, %v1545_v4  ;;  %v1547_v6 = vpop.eup %1546 }
 0x15a   :  { %1548 = vrcp.f32 %v363_v5  ;;  %v400_v5 = vcombine.high %v399_v62, %v399_v62 }
 0x15b   :  { %1550 = vpow2.f32 %v1474_v9 }
 0x167   :  { %v1549_v7 = vpop.eup %1548 }
 0x168   :  { %v375_v8 = vmul.f32 %v1549_v7, %v1547_v6  ;;  %v1551_v22 = vpop.eup %1550  ;;  %v374_v31 = vmul.f32 %v1549_v7, %v372_v24 }
 0x169   :  { %v364_v29 = vadd.f32 1.0, %v1551_v22 }
 0x16a   :  { %377 = vrot.lane.b32.xlu1 %v375_v8, %s1744_s1 }
 0x16b   :  { %1552 = vrcp.f32 %v364_v29  ;;  %v512_v29 = vrot.slane %v219_v26, %v1849_v18 }
 0x178   :  { %v1553_v42 = vpop.eup %1552 }
 0x1dc   :  { %v378_v33 = vpop.permute.xlu1 %377 }
 0x1dd   :  { %v380_v35 = vadd.f32 %v378_v33, %v374_v31 }
 0x1df   :  { %1554 = vtanh.f32 %v380_v35  ;;  %389 = vrot.lane.b32.xlu1 %v380_v35, %s1744_s1 }
 0x1ec   :  { %v1555_v44 = vpop.eup %1554 }
 0x1ed   :  { %v382_v45 = vmul.f32 %v1555_v44, %v1553_v42  ;;  %v513_v44 = vcombine.high %v512_v29, %v512_v29 }
 0x1ef   :  { %384 = vrot.lane.b32.xlu0 %v382_v45, %s1744_s1 }
 0x251   :  { %v390_v47 = vpop.permute.xlu1 %389 }
 0x252   :  { %v392_v48 = vsel %vm118_vm0, %v390_v47, %v1947_v46 }
 0x253   :  { %491 = vrot.lane.b32.xlu0 %v392_v48, %s1744_s1 }
 0x261   :  { %v385_v49 = vpop.permute.xlu0 %384 }
 0x262   :  { %v387_v50 = vsel %vm118_vm0, %v385_v49, %v1933_v43  ;;  %v195_v43 = vpop.f32.mrf.mxu0 }
 0x263   :  { %1475 = vmatmul.mubr.msk.f32.vlgmr.msra.gmra.mxu0 %vm282_vm1, %v387_v50  ;;  %v2038_v46 = vadd.f32 %v195_v43, %v1968_v51 }
 0x264   :  { %643 = vmatpush1.msra.mxu0 %v1837_v14  ;;  %690 = vmatprep.mubr.f32.mxu0 %v1741_v0  ;;  %v197_v53 = vpop.f32.mrf.mxu0 }
 0x265   :  { %644 = vmatprep.subr.mxu0 %v1843_v16  ;;  %v2041_v55 = vadd.f32 %v197_v53, %v1970_v52 }
 0x266   :  { %645 = vmatpush1.msra.mxu0 %v1852_v19 }
 0x267   :  { %646 = vmatprep.subr.mxu0 %v1867_v25  ;;  %v223_v58 = vcombine.high %v2038_v46, %v2041_v55 }
 0x268   :  { %647 = vmatpush1.msra.mxu0 %v1870_v27 }
 0x269   :  { %648 = vmatprep.subr.mxu0 %v1872_v28 }
 0x26a   :  { %649 = vmatpush1.msra.mxu0 %v1876_v30 }
 0x26b   :  { %650 = vmatprep.subr.mxu0 %v1880_v32 }
 0x26c   :  { %651 = vmatpush1.msra.mxu0 %v1886_v34 }
 0x26d   :  { %652 = vmatprep.subr.mxu0 %v1890_v36 }
 0x26e   :  { %653 = vmatpush1.msra.mxu0 %v1894_v37 }
 0x26f   :  { %654 = vmatprep.subr.mxu0 %v1898_v38 }
 0x270   :  { %655 = vmatpush1.msra.mxu0 %v1901_v39 }
 0x271   :  { %656 = vmatprep.subr.mxu0 %v1905_v40 }
 0x272   :  { %657 = vmatpush1.msra.mxu0 %v1909_v41 }
 0x273   :  { %858 = vmatprep.subr.mxu0 %v1832_v12 }
 0x2c5   :  { %v492_v11 = vpop.permute.xlu0 %491 }
 0x323   :  { %v472_v63 = vpop.f32.mrf.mxu0 }
 0x324   :  { %v473_v1 = vadd.f32 %v472_v63, %v399_v62 }
 0x325   :  { %v474_v4 = vpop.f32.mrf.mxu0 }
 0x326   :  { %v1476_v3 = vmul.f32 -1.442695, %v473_v1  ;;  %v475_v51 = vadd.f32 %v474_v4, %v400_v5  ;;  %v221_v5 = vcombine.high %v219_v26, %v219_v26 }
 0x328   :  { %1556 = vpow2.f32 %v1476_v3  ;;  %v1477_v10 = vmul.f32 -1.442695, %v475_v51 }
 0x329   :  { %1558 = vtanh.f32 %v475_v51  ;;  %v620_v51 = vrot.slane %v221_v5, %v1849_v18 }
 0x335   :  { %v1557_v6 = vpop.eup %1556 }
 0x336   :  { %v483_v7 = vadd.f32 1.0, %v1557_v6  ;;  %v1559_v52 = vpop.eup %1558 }
 0x338   :  { %1560 = vrcp.f32 %v483_v7 }
 0x339   :  { %1562 = vpow2.f32 %v1477_v10 }
 0x345   :  { %v1561_v8 = vpop.eup %1560 }
 0x346   :  { %v495_v9 = vmul.f32 %v1561_v8, %v1559_v52  ;;  %v1563_v59 = vpop.eup %1562  ;;  %v494_v15 = vmul.f32 %v1561_v8, %v492_v11 }
 0x347   :  { %v484_v13 = vadd.f32 1.0, %v1563_v59 }
 0x348   :  { %497 = vrot.lane.b32.xlu1 %v495_v9, %s1744_s1  ;;  %v621_v9 = vcombine.high %v620_v51, %v620_v51 }
 0x349   :  { %1564 = vrcp.f32 %v484_v13 }
 0x356   :  { %v1565_v21 = vpop.eup %1564 }
 0x3ba   :  { %v498_v17 = vpop.permute.xlu1 %497 }
 0x3bb   :  { %v500_v20 = vadd.f32 %v498_v17, %v494_v15 }
 0x3bd   :  { %1566 = vtanh.f32 %v500_v20 }
 0x3ca   :  { %v1567_v22 = vpop.eup %1566 }
 0x3cb   :  { %v2049_v23 = vmul.f32 %v1567_v22, %v1565_v21 }
 0x3cd   :  { %504 = vrot.lane.b32.xlu0 %v2049_v23, %s1744_s1 }
 0x43f   :  { %v505_v24 = vpop.permute.xlu0 %504 }
 0x440   :  { %1478 = vmatmul.mubr.msk.f32.vlgmr.msra.gmra.mxu1 %vm282_vm1, %v505_v24 }
 0x441   :  { %751 = vmatpush1.msra.mxu1 %v1837_v14  ;;  %798 = vmatprep.mubr.f32.mxu1 %v1741_v0 }
 0x442   :  { %752 = vmatprep.subr.mxu1 %v1843_v16 }
 0x443   :  { %753 = vmatpush1.msra.mxu1 %v1852_v19 }
 0x444   :  { %754 = vmatprep.subr.mxu1 %v1867_v25 }
 0x445   :  { %755 = vmatpush1.msra.mxu1 %v1870_v27 }
 0x446   :  { %756 = vmatprep.subr.mxu1 %v1872_v28 }
 0x447   :  { %757 = vmatpush1.msra.mxu1 %v1876_v30 }
 0x448   :  { %758 = vmatprep.subr.mxu1 %v1880_v32 }
 0x449   :  { %759 = vmatpush1.msra.mxu1 %v1886_v34 }
 0x44a   :  { %760 = vmatprep.subr.mxu1 %v1890_v36 }
 0x44b   :  { %761 = vmatpush1.msra.mxu1 %v1894_v37 }
 0x44c   :  { %762 = vmatprep.subr.mxu1 %v1898_v38 }
 0x44d   :  { %763 = vmatpush1.msra.mxu1 %v1901_v39 }
 0x44e   :  { %764 = vmatprep.subr.mxu1 %v1905_v40 }
 0x44f   :  { %765 = vmatpush1.msra.mxu1 %v1909_v41 }
 0x450   :  { %966 = vmatprep.subr.mxu1 %v1832_v12 }
 0x500   :  { %v584_v31 = vpop.f32.mrf.mxu1 }
 0x501   :  { %v585_v33 = vadd.f32 %v584_v31, %v512_v29 }
 0x502   :  { %v586_v42 = vpop.f32.mrf.mxu1 }
 0x503   :  { %v1479_v35 = vmul.f32 -1.442695, %v585_v33  ;;  %v587_v45 = vadd.f32 %v586_v42, %v513_v44  ;;  %v1283_v44 = vrot.slane %v2049_v23, 1 }
 0x505   :  { %1568 = vpow2.f32 %v1479_v35  ;;  %v1480_v54 = vmul.f32 -1.442695, %v587_v45 }
 0x506   :  { %1570 = vtanh.f32 %v587_v45 }
 0x512   :  { %v1569_v47 = vpop.eup %1568 }
 0x513   :  { %v595_v48 = vadd.f32 1.0, %v1569_v47  ;;  %v1571_v49 = vpop.eup %1570 }
 0x515   :  { %1572 = vrcp.f32 %v595_v48 }
 0x516   :  { %1574 = vpow2.f32 %v1480_v54 }
 0x522   :  { %v1573_v50 = vpop.eup %1572 }
 0x523   :  { %v603_v43 = vmul.f32 %v1573_v50, %v1571_v49  ;;  %v1575_v56 = vpop.eup %1574  ;;  %v602_v53 = vmul.f32 %v1573_v50, %v500_v20 }
 0x524   :  { %v596_v57 = vadd.f32 1.0, %v1575_v56 }
 0x525   :  { %605 = vrot.lane.b32.xlu1 %v603_v43, %s1744_s1 }
 0x526   :  { %1576 = vrcp.f32 %v596_v57 }
 0x533   :  { %v1577_v63 = vpop.eup %1576 }
 0x597   :  { %v606_v61 = vpop.permute.xlu1 %605 }
 0x598   :  { %v608_v62 = vadd.f32 %v606_v61, %v602_v53 }
 0x59a   :  { %1578 = vtanh.f32 %v608_v62 }
 0x5a7   :  { %v1579_v1 = vpop.eup %1578 }
 0x5a8   :  { %v610_v3 = vmul.f32 %v1579_v1, %v1577_v63 }
 0x5aa   :  { %612 = vrot.lane.b32.xlu0 %v610_v3, %s1744_s1  ;;  %v1269_v35 = vrot.slane %v610_v3, 7  ;;  %v1311_v49 = vsel %vm1297_vm2, %v1283_v44, %v610_v3 }
 0x5ac   :  { %v1298_v48 = vsel %vm1297_vm2, %v2049_v23, %v1269_v35  ;;  %v222_v23 = vcombine.low %v2038_v46, %v2041_v55 }
 0x5ae   :  { %v230_v56 = vrot.slane %v222_v23, %v1849_v18 }
 0x5b0   :  { %v728_v57 = vrot.slane %v230_v56, %v1849_v18 }
 0x5b2   :  { %v729_v1 = vcombine.high %v728_v57, %v728_v57 }
 0x61c   :  { %v613_v4 = vpop.permute.xlu0 %612 }
 0x61d   :  { %1481 = vmatmul.mubr.msk.f32.vlgmr.msra.gmra.mxu0 %vm282_vm1, %v613_v4 }
 0x61e   :  { %859 = vmatpush1.msra.mxu0 %v1837_v14  ;;  %906 = vmatprep.mubr.f32.mxu0 %v1741_v0 }
 0x61f   :  { %860 = vmatprep.subr.mxu0 %v1843_v16 }
 0x620   :  { %861 = vmatpush1.msra.mxu0 %v1852_v19 }
 0x621   :  { %862 = vmatprep.subr.mxu0 %v1867_v25 }
 0x622   :  { %863 = vmatpush1.msra.mxu0 %v1870_v27 }
 0x623   :  { %864 = vmatprep.subr.mxu0 %v1872_v28 }
 0x624   :  { %865 = vmatpush1.msra.mxu0 %v1876_v30 }
 0x625   :  { %866 = vmatprep.subr.mxu0 %v1880_v32 }
 0x626   :  { %867 = vmatpush1.msra.mxu0 %v1886_v34 }
 0x627   :  { %868 = vmatprep.subr.mxu0 %v1890_v36 }
 0x628   :  { %869 = vmatpush1.msra.mxu0 %v1894_v37 }
 0x629   :  { %870 = vmatprep.subr.mxu0 %v1898_v38 }
 0x62a   :  { %871 = vmatpush1.msra.mxu0 %v1901_v39 }
 0x62b   :  { %872 = vmatprep.subr.mxu0 %v1905_v40 }
 0x62c   :  { %873 = vmatpush1.msra.mxu0 %v1909_v41 }
 0x62d   :  { %1074 = vmatprep.subr.mxu0 %v1832_v12 }
 0x6dd   :  { %v692_v6 = vpop.f32.mrf.mxu0 }
 0x6de   :  { %v693_v7 = vadd.f32 %v692_v6, %v620_v51 }
 0x6df   :  { %v694_v8 = vpop.f32.mrf.mxu0 }
 0x6e0   :  { %v1482_v52 = vmul.f32 -1.442695, %v693_v7  ;;  %v695_v10 = vadd.f32 %v694_v8, %v621_v9 }
 0x6e2   :  { %1580 = vpow2.f32 %v1482_v52  ;;  %v1483_v20 = vmul.f32 -1.442695, %v695_v10 }
 0x6e3   :  { %1582 = vtanh.f32 %v695_v10 }
 0x6ef   :  { %v1581_v59 = vpop.eup %1580 }
 0x6f0   :  { %v703_v11 = vadd.f32 1.0, %v1581_v59  ;;  %v1583_v13 = vpop.eup %1582 }
 0x6f2   :  { %1584 = vrcp.f32 %v703_v11 }
 0x6f3   :  { %1586 = vpow2.f32 %v1483_v20 }
 0x6ff   :  { %v1585_v15 = vpop.eup %1584 }
 0x700   :  { %v711_v17 = vmul.f32 %v1585_v15, %v1583_v13  ;;  %v1587_v21 = vpop.eup %1586  ;;  %v710_v24 = vmul.f32 %v1585_v15, %v608_v62 }
 0x701   :  { %v704_v22 = vadd.f32 1.0, %v1587_v21 }
 0x702   :  { %713 = vrot.lane.b32.xlu1 %v711_v17, %s1744_s1 }
 0x703   :  { %1588 = vrcp.f32 %v704_v22 }
 0x710   :  { %v1589_v31 = vpop.eup %1588 }
 0x774   :  { %v714_v26 = vpop.permute.xlu1 %713 }
 0x775   :  { %v716_v29 = vadd.f32 %v714_v26, %v710_v24  ;;  %v238_v26 = vcombine.high %v230_v56, %v230_v56 }
 0x777   :  { %1590 = vtanh.f32 %v716_v29 }
 0x784   :  { %v1591_v33 = vpop.eup %1590 }
 0x785   :  { %v718_v42 = vmul.f32 %v1591_v33, %v1589_v31 }
 0x787   :  { %720 = vrot.lane.b32.xlu0 %v718_v42, %s1744_s1  ;;  %v1271_v45 = vrot.slane %v718_v42, 6  ;;  %v1285_v47 = vrot.slane %v718_v42, 7 }
 0x789   :  { %v1300_v50 = vsel %vm1299_vm3, %v1298_v48, %v1271_v45  ;;  %v1312_v43 = vsel %vm1299_vm3, %v1311_v49, %v1285_v47 }
 0x7f9   :  { %v721_v54 = vpop.permute.xlu0 %720 }
 0x7fa   :  { %1484 = vmatmul.mubr.msk.f32.vlgmr.msra.gmra.mxu1 %vm282_vm1, %v721_v54 }
 0x7fb   :  { %967 = vmatpush1.msra.mxu1 %v1837_v14  ;;  %1014 = vmatprep.mubr.f32.mxu1 %v1741_v0 }
 0x7fc   :  { %968 = vmatprep.subr.mxu1 %v1843_v16 }
 0x7fd   :  { %969 = vmatpush1.msra.mxu1 %v1852_v19 }
 0x7fe   :  { %970 = vmatprep.subr.mxu1 %v1867_v25 }
 0x7ff   :  { %971 = vmatpush1.msra.mxu1 %v1870_v27 }
 0x800   :  { %972 = vmatprep.subr.mxu1 %v1872_v28 }
 0x801   :  { %973 = vmatpush1.msra.mxu1 %v1876_v30 }
 0x802   :  { %974 = vmatprep.subr.mxu1 %v1880_v32 }
 0x803   :  { %975 = vmatpush1.msra.mxu1 %v1886_v34 }
 0x804   :  { %976 = vmatprep.subr.mxu1 %v1890_v36 }
 0x805   :  { %977 = vmatpush1.msra.mxu1 %v1894_v37 }
 0x806   :  { %978 = vmatprep.subr.mxu1 %v1898_v38 }
 0x807   :  { %979 = vmatpush1.msra.mxu1 %v1901_v39 }
 0x808   :  { %980 = vmatprep.subr.mxu1 %v1905_v40 }
 0x809   :  { %981 = vmatpush1.msra.mxu1 %v1909_v41 }
 0x80a   :  { %1172 = vmatprep.subr.mxu1 %v1832_v12 }
 0x8ba   :  { %v800_v53 = vpop.f32.mrf.mxu1 }
 0x8bb   :  { %v801_v61 = vadd.f32 %v800_v53, %v728_v57 }
 0x8bc   :  { %v802_v63 = vpop.f32.mrf.mxu1 }
 0x8bd   :  { %v1485_v62 = vmul.f32 -1.442695, %v801_v61  ;;  %v803_v3 = vadd.f32 %v802_v63, %v729_v1 }
 0x8bf   :  { %1592 = vpow2.f32 %v1485_v62  ;;  %v1486_v7 = vmul.f32 -1.442695, %v803_v3 }
 0x8c0   :  { %1594 = vtanh.f32 %v803_v3 }
 0x8cc   :  { %v1593_v4 = vpop.eup %1592 }
 0x8cd   :  { %v811_v5 = vadd.f32 1.0, %v1593_v4  ;;  %v1595_v51 = vpop.eup %1594 }
 0x8cf   :  { %1596 = vrcp.f32 %v811_v5 }
 0x8d0   :  { %1598 = vpow2.f32 %v1486_v7 }
 0x8dc   :  { %v1597_v12 = vpop.eup %1596 }
 0x8dd   :  { %v819_v6 = vmul.f32 %v1597_v12, %v1595_v51  ;;  %v1599_v52 = vpop.eup %1598  ;;  %v818_v9 = vmul.f32 %v1597_v12, %v716_v29  ;;  %v836_v29 = vrot.slane %v238_v26, %v1849_v18 }
 0x8de   :  { %v812_v8 = vadd.f32 1.0, %v1599_v52 }
 0x8df   :  { %821 = vrot.lane.b32.xlu1 %v819_v6, %s1744_s1  ;;  %v837_v44 = vcombine.high %v836_v29, %v836_v29 }
 0x8e0   :  { %1600 = vrcp.f32 %v812_v8 }
 0x8ed   :  { %v1601_v11 = vpop.eup %1600 }
 0x951   :  { %v822_v10 = vpop.permute.xlu1 %821 }
 0x952   :  { %v824_v59 = vadd.f32 %v822_v10, %v818_v9 }
 0x954   :  { %1602 = vtanh.f32 %v824_v59 }
 0x961   :  { %v1603_v13 = vpop.eup %1602 }
 0x962   :  { %v826_v15 = vmul.f32 %v1603_v13, %v1601_v11 }
 0x964   :  { %828 = vrot.lane.b32.xlu0 %v826_v15, %s1744_s1  ;;  %v1273_v17 = vrot.slane %v826_v15, 5  ;;  %v1287_v20 = vrot.slane %v826_v15, 6 }
 0x966   :  { %v1302_v21 = vsel %vm1301_vm4, %v1300_v50, %v1273_v17  ;;  %v1313_v22 = vsel %vm1301_vm4, %v1312_v43, %v1287_v20 }
 0x9d6   :  { %v829_v24 = vpop.permute.xlu0 %828 }
 0x9d7   :  { %1487 = vmatmul.mubr.msk.f32.vlgmr.msra.gmra.mxu0 %vm282_vm1, %v829_v24 }
 0x9d8   :  { %1075 = vmatpush1.msra.mxu0 %v1837_v14  ;;  %1122 = vmatprep.mubr.f32.mxu0 %v1741_v0 }
 0x9d9   :  { %1076 = vmatprep.subr.mxu0 %v1843_v16 }
 0x9da   :  { %1077 = vmatpush1.msra.mxu0 %v1852_v19 }
 0x9db   :  { %1078 = vmatprep.subr.mxu0 %v1867_v25 }
 0x9dc   :  { %1079 = vmatpush1.msra.mxu0 %v1870_v27 }
 0x9dd   :  { %1080 = vmatprep.subr.mxu0 %v1872_v28 }
 0x9de   :  { %1081 = vmatpush1.msra.mxu0 %v1876_v30 }
 0x9df   :  { %1082 = vmatprep.subr.mxu0 %v1880_v32 }
 0x9e0   :  { %1083 = vmatpush1.msra.mxu0 %v1886_v34 }
 0x9e1   :  { %1084 = vmatprep.subr.mxu0 %v1890_v36 }
 0x9e2   :  { %1085 = vmatpush1.msra.mxu0 %v1894_v37 }
 0x9e3   :  { %1086 = vmatprep.subr.mxu0 %v1898_v38 }
 0x9e4   :  { %1087 = vmatpush1.msra.mxu0 %v1901_v39 }
 0x9e5   :  { %1088 = vmatprep.subr.mxu0 %v1905_v40 }
 0x9e6   :  { %1089 = vmatpush1.msra.mxu0 %v1909_v41 }
 0xa97   :  { %v908_v31 = vpop.f32.mrf.mxu0 }
 0xa98   :  { %v909_v33 = vadd.f32 %v908_v31, %v836_v29 }
 0xa99   :  { %v910_v42 = vpop.f32.mrf.mxu0 }
 0xa9a   :  { %v1488_v35 = vmul.f32 -1.442695, %v909_v33  ;;  %v911_v45 = vadd.f32 %v910_v42, %v837_v44 }
 0xa9c   :  { %1604 = vpow2.f32 %v1488_v35  ;;  %v1489_v54 = vmul.f32 -1.442695, %v911_v45 }
 0xa9d   :  { %1606 = vtanh.f32 %v911_v45 }
 0xaa9   :  { %v1605_v47 = vpop.eup %1604 }
 0xaaa   :  { %v919_v48 = vadd.f32 1.0, %v1605_v47  ;;  %v1607_v49 = vpop.eup %1606 }
 0xaac   :  { %1608 = vrcp.f32 %v919_v48 }
 0xaad   :  { %1610 = vpow2.f32 %v1489_v54 }
 0xab9   :  { %v1609_v50 = vpop.eup %1608 }
 0xaba   :  { %v927_v43 = vmul.f32 %v1609_v50, %v1607_v49  ;;  %v1611_v23 = vpop.eup %1610  ;;  %v926_v57 = vmul.f32 %v1609_v50, %v824_v59 }
 0xabb   :  { %v920_v56 = vadd.f32 1.0, %v1611_v23 }
 0xabc   :  { %929 = vrot.lane.b32.xlu1 %v927_v43, %s1744_s1 }
 0xabd   :  { %1612 = vrcp.f32 %v920_v56 }
 0xaca   :  { %v1613_v62 = vpop.eup %1612 }
 0xb2e   :  { %v930_v53 = vpop.permute.xlu1 %929 }
 0xb2f   :  { %v932_v61 = vadd.f32 %v930_v53, %v926_v57 }
 0xb31   :  { %1614 = vtanh.f32 %v932_v61 }
 0xb3e   :  { %v1615_v63 = vpop.eup %1614 }
 0xb3f   :  { %v934_v1 = vmul.f32 %v1615_v63, %v1613_v62 }
 0xb41   :  { %936 = vrot.lane.b32.xlu0 %v934_v1, %s1744_s1  ;;  %v1275_v3 = vrot.slane %v934_v1, 4  ;;  %v1289_v4 = vrot.slane %v934_v1, 5 }
 0xb43   :  { %v1304_v5 = vsel %vm1303_vm5, %v1302_v21, %v1275_v3  ;;  %v1314_v51 = vsel %vm1303_vm5, %v1313_v22, %v1289_v4 }
 0xbb3   :  { %v937_v12 = vpop.permute.xlu0 %936 }
 0xbb4   :  { %1490 = vmatmul.mubr.msk.f32.vlgmr.msra.gmra.mxu1 %vm282_vm1, %v937_v12 }
 0xbb5   :  { %1173 = vmatpush1.msra.mxu1 %v1837_v14  ;;  %1220 = vmatprep.mubr.f32.mxu1 %v1741_v0  ;;  %v237_v0 = vrot.slane %v223_v58, %v1849_v18 }
 0xbb6   :  { %1174 = vmatprep.subr.mxu1 %v1843_v16 }
 0xbb7   :  { %1175 = vmatpush1.msra.mxu1 %v1852_v19  ;;  %v944_v14 = vrot.slane %v237_v0, %v1849_v18  ;;  %v239_v13 = vcombine.high %v237_v0, %v237_v0 }
 0xbb8   :  { %1176 = vmatprep.subr.mxu1 %v1867_v25 }
 0xbb9   :  { %1177 = vmatpush1.msra.mxu1 %v1870_v27  ;;  %v1052_v15 = vrot.slane %v239_v13, %v1849_v18 }
 0xbba   :  { %1178 = vmatprep.subr.mxu1 %v1872_v28  ;;  %v945_v28 = vcombine.high %v944_v14, %v944_v14 }
 0xbbb   :  { %1179 = vmatpush1.msra.mxu1 %v1876_v30  ;;  %v1053_v24 = vcombine.high %v1052_v15, %v1052_v15 }
 0xbbc   :  { %1180 = vmatprep.subr.mxu1 %v1880_v32 }
 0xbbd   :  { %1181 = vmatpush1.msra.mxu1 %v1886_v34 }
 0xbbe   :  { %1182 = vmatprep.subr.mxu1 %v1890_v36 }
 0xbbf   :  { %1183 = vmatpush1.msra.mxu1 %v1894_v37 }
 0xbc0   :  { %1184 = vmatprep.subr.mxu1 %v1898_v38 }
 0xbc1   :  { %1185 = vmatpush1.msra.mxu1 %v1901_v39 }
 0xbc2   :  { %1186 = vmatprep.subr.mxu1 %v1905_v40 }
 0xbc3   :  { %1187 = vmatpush1.msra.mxu1 %v1909_v41 }
 0xc74   :  { %v1016_v16 = vpop.f32.mrf.mxu1 }
 0xc75   :  { %v1017_v19 = vadd.f32 %v1016_v16, %v944_v14  ;;  %v1325_v16 = vld [vmem:[%s2241_s6 + $0x38] sm:$0xff] }
 0xc76   :  { %v1018_v27 = vpop.f32.mrf.mxu1  ;;  %1512 = vmatprep.subr.mxu0 %v1325_v16 }
 0xc77   :  { %v1491_v25 = vmul.f32 -1.442695, %v1017_v19  ;;  %v1019_v30 = vadd.f32 %v1018_v27, %v945_v28  ;;  %v1322_v19 = vld [vmem:[%s2241_s6 + $0x20] sm:$0xff]  ;;  %v1320_v27 = vld [vmem:[%s2241_s6 + $0x10] sm:$0xff]  ;;  %v1319_v28 = vld [vmem:[%s2241_s6 + $0x8] sm:$0xff] }
 0xc79   :  { %1616 = vpow2.f32 %v1491_v25  ;;  %v1492_v39 = vmul.f32 -1.442695, %v1019_v30  ;;  %v1321_v25 = vld [vmem:[%s2241_s6 + $0x18] sm:$0xff] }
 0xc7a   :  { %1618 = vtanh.f32 %v1019_v30  ;;  %v1318_v30 = vld [vmem:[%s2241_s6] sm:$0xff] }
 0xc86   :  { %v1617_v32 = vpop.eup %1616 }
 0xc87   :  { %v1027_v34 = vadd.f32 1.0, %v1617_v32  ;;  %v1619_v36 = vpop.eup %1618 }
 0xc89   :  { %1620 = vrcp.f32 %v1027_v34 }
 0xc8a   :  { %1622 = vpow2.f32 %v1492_v39 }
 0xc96   :  { %v1621_v37 = vpop.eup %1620 }
 0xc97   :  { %v1035_v38 = vmul.f32 %v1621_v37, %v1619_v36  ;;  %v1623_v40 = vpop.eup %1622  ;;  %v1034_v46 = vmul.f32 %v1621_v37, %v932_v61 }
 0xc98   :  { %v1028_v41 = vadd.f32 1.0, %v1623_v40 }
 0xc99   :  { %1037 = vrot.lane.b32.xlu1 %v1035_v38, %s1744_s1 }
 0xc9a   :  { %1624 = vrcp.f32 %v1028_v41 }
 0xca7   :  { %v1625_v6 = vpop.eup %1624 }
 0xd0b   :  { %v1038_v55 = vpop.permute.xlu1 %1037 }
 0xd0c   :  { %v1040_v58 = vadd.f32 %v1038_v55, %v1034_v46 }
 0xd0e   :  { %1626 = vtanh.f32 %v1040_v58 }
 0xd1b   :  { %v1627_v7 = vpop.eup %1626 }
 0xd1c   :  { %v1042_v52 = vmul.f32 %v1627_v7, %v1625_v6 }
 0xd1e   :  { %1044 = vrot.lane.b32.xlu0 %v1042_v52, %s1744_s1  ;;  %v1277_v8 = vrot.slane %v1042_v52, 3  ;;  %v1291_v9 = vrot.slane %v1042_v52, 4 }
 0xd20   :  { %v1306_v10 = vsel %vm1305_vm6, %v1304_v5, %v1277_v8  ;;  %v1315_v59 = vsel %vm1305_vm6, %v1314_v51, %v1291_v9 }
 0xd90   :  { %v1045_v11 = vpop.permute.xlu0 %1044 }
 0xd91   :  { %1493 = vmatmul.mubr.msk.f32.vlgmr.msra.gmra.mxu0 %vm282_vm1, %v1045_v11 }
 0xd92   :  { %1513 = vmatpush3.msra.mxu0 %v1325_v16 }
 0xe51   :  { %v1124_v17 = vpop.f32.mrf.mxu0 }
 0xe52   :  { %v1125_v20 = vadd.f32 %v1124_v17, %v1052_v15 }
 0xe53   :  { %v1126_v22 = vpop.f32.mrf.mxu0 }
 0xe54   :  { %v1494_v21 = vmul.f32 -1.442695, %v1125_v20  ;;  %v1127_v26 = vadd.f32 %v1126_v22, %v1053_v24 }
 0xe56   :  { %1628 = vpow2.f32 %v1494_v21  ;;  %v1495_v44 = vmul.f32 -1.442695, %v1127_v26 }
 0xe57   :  { %1630 = vtanh.f32 %v1127_v26 }
 0xe63   :  { %v1629_v29 = vpop.eup %1628 }
 0xe64   :  { %v1135_v31 = vadd.f32 1.0, %v1629_v29  ;;  %v1631_v33 = vpop.eup %1630 }
 0xe66   :  { %1632 = vrcp.f32 %v1135_v31 }
 0xe67   :  { %1634 = vpow2.f32 %v1495_v44 }
 0xe73   :  { %v1633_v35 = vpop.eup %1632 }
 0xe74   :  { %v1143_v42 = vmul.f32 %v1633_v35, %v1631_v33  ;;  %v1635_v45 = vpop.eup %1634  ;;  %v1142_v47 = vmul.f32 %v1633_v35, %v1040_v58 }
 0xe75   :  { %v1136_v18 = vadd.f32 1.0, %v1635_v45 }
 0xe76   :  { %1145 = vrot.lane.b32.xlu1 %v1143_v42, %s1744_s1 }
 0xe77   :  { %1636 = vrcp.f32 %v1136_v18 }
 0xe84   :  { %v1637_v50 = vpop.eup %1636 }
 0xee8   :  { %v1146_v48 = vpop.permute.xlu1 %1145 }
 0xee9   :  { %v2172_v49 = vadd.f32 %v1146_v48, %v1142_v47 }
 0xeeb   :  { %1638 = vtanh.f32 %v2172_v49 }
 0xef8   :  { %v1639_v43 = vpop.eup %1638 }
 0xef9   :  { %v1150_v54 = vmul.f32 %v1639_v43, %v1637_v50 }
 0xefb   :  { %1152 = vrot.lane.b32.xlu0 %v1150_v54, %s1744_s1  ;;  %v1279_v23 = vrot.slane %v1150_v54, 2  ;;  %v1293_v56 = vrot.slane %v1150_v54, 3 }
 0xefd   :  { %v1308_v57 = vsel %vm1307_vm7, %v1306_v10, %v1279_v23  ;;  %v1316_v53 = vsel %vm1307_vm7, %v1315_v59, %v1293_v56 }
 0xf6d   :  { %v1153_v61 = vpop.permute.xlu0 %1152 }
 0xf6e   :  { %1251 = vst.msk [vmem:[#allocation6] sm:$0x3] %vm1250_vm8, %v1153_v61  ;;  %1496 = vmatmul.mubr.msk.f32.vlgmr.msra.gmra.mxu1 %vm282_vm1, %v1153_v61 }
0x102e   :  { %v1222_v62 = vpop.f32.mrf.mxu1 }
0x102f   :  { %v1223_v63 = vadd.f32 %v1222_v62, %v1987_v60  ;;  %v1324_v60 = vld [vmem:[%s2241_s6 + $0x30] sm:$0xff] }
0x1030   :  { %v1224_v3 = vpop.f32.mrf.mxu1  ;;  %1514 = vmatprep.subr.mxu0 %v1324_v60 }
0x1031   :  { %v1497_v1 = vmul.f32 -1.442695, %v1223_v63  ;;  %v1225_v4 = vadd.f32 %v1224_v3, %v1992_v2  ;;  %v1323_v2 = vld [vmem:[%s2241_s6 + $0x28] sm:$0xff]  ;;  %1515 = vmatpush3.msra.mxu0 %v1324_v60  ;;  %s1745_s6 = smov [#allocation6]  }
0x1032   :  { %1516 = vmatprep.subr.mxu0 %v1323_v2  ;;  %s1437_s4 = sshll.u32 %s1745_s6, 4  ;;  %s1438_s4 = int_to_ptr.vmem [resolvable:$true] %s1437_s4 }
0x1033   :  { %1640 = vpow2.f32 %v1497_v1  ;;  %1517 = vmatpush3.msra.mxu0 %v1323_v2  ;;  %v1498_v32 = vmul.f32 -1.442695, %v1225_v4  ;;  %p1677_p6 = scmp.lt.s32.totalorder %s1438_s4, %s1438_s4 }
0x1034   :  { %1642 = vtanh.f32 %v1225_v4  ;;  %1518 = vmatprep.subr.mxu0 %v1322_v19 }
0x1035   :  { %1519 = vmatpush3.msra.mxu0 %v1322_v19 }
0x1036   :  { %1520 = vmatprep.subr.mxu0 %v1321_v25 }
0x1037   :  { %1521 = vmatpush3.msra.mxu0 %v1321_v25 }
0x1038   :  { %1522 = vmatprep.subr.mxu0 %v1320_v27 }
0x1039   :  { %1523 = vmatpush3.msra.mxu0 %v1320_v27 }
0x103a   :  { %1524 = vmatprep.subr.mxu0 %v1319_v28 }
0x103b   :  { %1525 = vmatpush3.msra.mxu0 %v1319_v28 }
0x103c   :  { %1526 = vmatprep.subr.mxu0 %v1318_v30 }
0x103d   :  { %1527 = vmatpush3.msra.mxu0 %v1318_v30 }
0x1040   :  { %v1641_v5 = vpop.eup %1640 }
0x1041   :  { %v1233_v51 = vadd.f32 1.0, %v1641_v5  ;;  %v1643_v12 = vpop.eup %1642 }
0x1043   :  { %1644 = vrcp.f32 %v1233_v51 }
0x1044   :  { %1646 = vpow2.f32 %v1498_v32 }
0x1050   :  { %v1645_v0 = vpop.eup %1644 }
0x1051   :  { %v1241_v14 = vmul.f32 %v1645_v0, %v1643_v12  ;;  %v1647_v34 = vpop.eup %1646  ;;  %v1240_v37 = vmul.f32 %v1645_v0, %v2172_v49 }
0x1052   :  { %v1234_v36 = vadd.f32 1.0, %v1647_v34 }
0x1053   :  { %1243 = vrot.lane.b32.xlu1 %v1241_v14, %s1744_s1 }
0x1054   :  { %1648 = vrcp.f32 %v1234_v36 }
0x1061   :  { %v1649_v40 = vpop.eup %1648 }
0x10c5   :  { %v1244_v38 = vpop.permute.xlu1 %1243 }
0x10c6   :  { %v1246_v39 = vadd.f32 %v1244_v38, %v1240_v37 }
0x10c8   :  { %1650 = vtanh.f32 %v1246_v39 }
0x10d5   :  { %v1651_v41 = vpop.eup %1650 }
0x10d6   :  { %v1248_v46 = vmul.f32 %v1651_v41, %v1649_v40 }
0x10d8   :  { %v1281_v55 = vrot.slane %v1248_v46, 1  ;;  %v1295_v58 = vrot.slane %v1248_v46, 2 }
0x10da   :  { %v1310_v6 = vsel %vm1309_vm9, %v1308_v57, %v1281_v55  ;;  %v1317_v7 = vsel %vm1309_vm9, %v1316_v53, %v1295_v58 }
0x10db   :  { %1335 = vrot.lane.b32.xlu0 %v1310_v6, %s1744_s1  ;;  %1337 = vrot.lane.b32.xlu1 %v1317_v7, %s1744_s1 }
0x10df   :  { %1253 = vrot.lane.b32.xlu0 %v1248_v46, %s1743_s25  ;;  %1259 = vrot.lane.b32.xlu1 %v2172_v49, %s1744_s1  ;;  %s1672_s1 = scalar_lea.vmem %s1438_s4, 64 }
0x10e0   :  { %p1673_p5 = scmp.ne.s32.totalorder %s1438_s4, %s1672_s1  ;;  %p1678_p7 = scmp.lt.s32.totalorder %s1672_s1, %s1672_s1 }
0x10e2   :  { %p1679_p8 = por %p1678_p7, %p1677_p6 }
0x10e3   :  { %1264 = vrot.lane.b32.xlu0 %v1246_v39, %s1743_s25 }
0x10e4   :  { %p1680_p9 = pnand %p1679_p8, %p1673_p5 }
0x114d   :  { %v1336_v52 = vpop.permute.xlu0 %1335  ;;  %v1338_v8 = vpop.permute.xlu1 %1337 }
0x114e   :  { %1528 = vmatprep.mubr.msk.f32.mxu0 %vm282_vm1, %v1336_v52 }
0x114f   :  { %1529 = vmatmul.mubr.msk.f32.vlgmr.msra.gmra.mxu0 %vm282_vm1, %v1338_v8 }
0x1151   :  { %v1254_v9 = vpop.permute.xlu0 %1253  ;;  %v1260_v10 = vpop.permute.xlu1 %1259 }
0x1152   :  { %1257 = vst.msk [vmem:[#allocation6 + $0x2] sm:$0x3] %vm1250_vm8, %v1254_v9  ;;  %1262 = vst.msk [vmem:[#allocation8] sm:$0x3] %vm1250_vm8, %v1260_v10 }
0x1155   :  { %v1265_v59 = vpop.permute.xlu0 %1264 }
0x1156   :  { %1268 = vst.msk [vmem:[#allocation8 + $0x2] sm:$0x3] %vm1250_vm8, %v1265_v59 }
0x1157   :  { %1683 = shalt.err (!%p1680_p9)
}
0x1158   :  { %s1746_s12 = smov 2   ;;  %s1747_s15 = smov [#allocation8]  }
0x1159   :  { %1443 = dma.vmem_to_hbm [thread:$0]  %s1438_s4, 64, %s2244_s9, [#allocation7], %s1743_s25, %s1743_s25, %s1746_s12  }
0x115a   :  { %s1449_s16 = sshll.u32 %s1747_s15, 4  ;;  %s1450_s16 = int_to_ptr.vmem [resolvable:$true] %s1449_s16 }
0x115b   :  { %s1692_s17 = scalar_lea.vmem %s1450_s16, 64  ;;  %p1697_p11 = scmp.lt.s32.totalorder %s1450_s16, %s1450_s16 }
0x115c   :  { %p1693_p10 = scmp.ne.s32.totalorder %s1450_s16, %s1692_s17  ;;  %p1698_p12 = scmp.lt.s32.totalorder %s1692_s17, %s1692_s17 }
0x115e   :  { %p1699_p13 = por %p1698_p12, %p1697_p11 }
0x1160   :  { %p1700_p0 = pnand %p1699_p13, %p1693_p10 }
0x1162   :  { %1703 = shalt.err (!%p1700_p0)
}
0x1163   :  { %1455 = dma.vmem_to_hbm [thread:$0]  %s1450_s16, 64, %s2245_s10, [#allocation7], %s1743_s25, %s1743_s25, %s1746_s12  }
0x1164   :  { %v1499_v11 = vld [vmem:[%s2242_s7] ss:$0 sm:$0xff]  ;;  %s1748_s9 = smov [#allocation5]  }
0x1165   :  { %s1425_s21 = sshll.u32 %s1748_s9, 4  ;;  %s1426_s21 = int_to_ptr.vmem [resolvable:$true] %s1425_s21 }
0x1166   :  { %s1712_s3 = scalar_lea.vmem %s1426_s21, 256  ;;  %p1717_p2 = scmp.lt.s32.totalorder %s1426_s21, %s1426_s21 }
0x1167   :  { %p1713_p1 = scmp.ne.s32.totalorder %s1426_s21, %s1712_s3  ;;  %p1718_p3 = scmp.lt.s32.totalorder %s1712_s3, %s1712_s3 }
0x1169   :  { %p1719_p4 = por %p1718_p3, %p1717_p2 }
0x116b   :  { %p1720_p5 = pnand %p1719_p4, %p1713_p1 }
0x120f   :  { %v1530_v13 = vpop.f32.mrf.mxu0 }
0x1210   :  { %v1415_v15 = vadd.f32 %v1530_v13, %v1499_v11 }
0x1211   :  { %v1409_v17 = vpop.f32.mrf.mxu0 }
0x1212   :  { %1419 = vst.msk [vmem:[#allocation5 + $0x8] sm:$0xff] %vm118_vm0, %v1415_v15  ;;  %v1410_v20 = vadd.f32 %v1499_v11, %v1409_v17 }
0x1214   :  { %1418 = vst.msk [vmem:[#allocation5] sm:$0xff] %vm118_vm0, %v1410_v20 }
0x1215   :  { %1723 = shalt.err (!%p1720_p5)
}
0x1216   :  { %s1749_s10 = smov 128   ;;  %s1750_s7 = smov 8  }
0x1217   :  { %1431 = dma.vmem_to_hbm [thread:$0]  %s1426_s21, 256, %s2243_s8, [#allocation4], %s1749_s10, %s1749_s10, %s1750_s7  }
0x1218   :  { %1734 = dma.done.wait [#allocation4], 256  }
0x1219   :  { %1735 = vsyncadd [#allocation4], 4294967040 }
0x121a   :  { %1736 = dma.done.wait [#allocation7], 128  }
0x121b   :  { %1737 = vsyncadd [#allocation7], 4294967168 }
0x121c   :  { %1465 = vsyncpa [#allocation3], 1 }
0x121d   :  { %1466 = vsyncpa [#allocation4], 1 }
0x121e   :  { %1467 = vsyncpa [#allocation7], 1 }

</bundles_post_ra>
